<compile_context>
chip_gen: v5e
topology: v5e:2x2
jax: 0.10.0
libtpu: 0.0.40
codegen_flags: <defaults>
</compile_context>

<pallas_src>
import jax
import jax.numpy as jnp
from jax import lax
from jax.experimental import pallas as pl
from jax.experimental.pallas import tpu as pltpu


def _round_up(x, m):
    return ((x + m - 1) // m) * m


def _num_tensorcores_per_chip():
    # v7x exposes 2 TensorCores per chip (batch-parallel split pays off there);
    # v5e / v6e have a single TC, so splitting the batch would only double the
    # number of serial recurrence passes.
    try:
        kind = jax.devices()[0].device_kind.lower()
    except Exception:
        return 1
    return 2 if "v7" in kind else 1


def _sigmoid(x):
    # exact identity: sigmoid(x) = 0.5 * tanh(0.5 x) + 0.5
    # keeps the transcendental on the EUP tanh path (no VPU divide on v5e).
    return 0.5 * jnp.tanh(0.5 * x) + 0.5


def gru_kernel(maxlen_ref, gx_ref, len_ref, whh_ref, bhn_ref,
               out_ref, hid_ref, h_scr):
    """One (batch_tile, time_chunk) grid step of the GRU recurrence.

    maxlen_ref: (n_btiles,)           i32  SMEM scalar prefetch, per-tile max len
    gx_ref  : (T_CHUNK, B_TILE, 3Hp)  bf16 precomputed x@W_ih + biases (r|z|n)
    len_ref : (B_TILE, 1)             i32  sequence lengths
    whh_ref : (Hp, 3Hp)               bf16 fused hidden-to-hidden weights
    bhn_ref : (1, Hp)                 f32  b_hh of the n gate
    out_ref : (T_CHUNK, B_TILE, Hp)   f32  time-major outputs (dense per-step store)
    hid_ref : (B_TILE, Hp)            f32  final hidden state
    h_scr   : (B_TILE, Hp)            f32  hidden carried across time chunks
    """
    b = pl.program_id(0)
    c = pl.program_id(1)
    t_chunk, bt, _ = gx_ref.shape
    hp = hid_ref.shape[-1]
    t_base = c * t_chunk

    @pl.when(c == 0)
    def _():
        h_scr[...] = jnp.zeros_like(h_scr)

    # Skip chunks entirely past every sequence of this batch tile:
    # hidden stays frozen, outputs are zero (pack_padded_sequence semantics).
    active = t_base < maxlen_ref[b]

    @pl.when(active)
    def _():
        # loop-invariant work hoisted out of the timestep loop
        whh = whh_ref[...]                                    # (Hp, 3Hp) bf16
        b_hn = jnp.broadcast_to(bhn_ref[...], (bt, hp))       # (B_TILE, Hp) f32
        lens = len_ref[...]                                   # (B_TILE, 1) i32

        def step(i, h):
            gx = gx_ref[i]                                    # (B_TILE, 3Hp) bf16
            gh = jnp.dot(h.astype(jnp.bfloat16), whh,
                         preferred_element_type=jnp.float32)  # (B_TILE, 3Hp) f32
            # per-gate f32 slices keep the live f32 gx footprint ~3x smaller
            r = _sigmoid(gx[:, 0:hp].astype(jnp.float32) + gh[:, 0:hp])
            z = _sigmoid(gx[:, hp:2 * hp].astype(jnp.float32) + gh[:, hp:2 * hp])
            n = jnp.tanh(gx[:, 2 * hp:3 * hp].astype(jnp.float32)
                         + r * (gh[:, 2 * hp:3 * hp] + b_hn))
            h_new = (1.0 - z) * n + z * h
            valid = lens > (t_base + i)                       # (B_TILE, 1) bool
            out_ref[i] = jnp.where(valid, h_new, 0.0)         # dense (B_TILE,Hp) store
            return jnp.where(valid, h_new, h)

        h0 = h_scr[...]
        if t_chunk <= 16:
            # small static trip count: fully unrolled (all indices static)
            h = h0
            for i in range(t_chunk):
                h = step(i, h)
        else:
            # long chunks: bounded code size, still visible to the scheduler
            h = lax.fori_loop(0, t_chunk, step, h0, unroll=8)
        h_scr[...] = h

    @pl.when(jnp.logical_not(active))
    def _():
        out_ref[...] = jnp.zeros_like(out_ref)

    @pl.when(c == pl.num_programs(1) - 1)
    def _():
        hid_ref[...] = h_scr[...]


def rnn_forward(text, text_lengths, params):
    """text: (T, B) int32 token ids (seq-major), text_lengths: (B,) int32."""
    emb_table = params["embedding"]          # (V, E)
    w_ih = params["w_ih"]                    # (3H, E)  torch layout, gates (r,z,n)
    w_hh = params["w_hh"]                    # (3H, H)
    b_ih = params["b_ih"]                    # (3H,)
    b_hh = params["b_hh"]                    # (3H,)
    w_fc = params["w_fc"]                    # (O, H)
    b_fc = params["b_fc"]                    # (O,)

    T, B = text.shape
    H = w_hh.shape[1]

    # ---- fused / padded layout (lane-dense: H -> multiple of 128) ----------
    Hp = _round_up(H, 128)
    G = 3 * Hp
    Bp = _round_up(B, 8)
    # larger time chunks amortize the ~0.35us per-grid-step pipeline overhead
    T_CHUNK = max(8, min(64, _round_up(T, 8)))
    Tp = _round_up(T, T_CHUNK)
    # split batch across TensorCores only where there are >1 TCs per chip
    n_tc = _num_tensorcores_per_chip()
    n_btiles = n_tc if (n_tc > 1 and Bp % (8 * n_tc) == 0) else 1
    B_TILE = Bp // n_btiles

    def col_block(w):                        # (H, in) -> (in, Hp), zero-padded
        return jnp.pad(w.T, ((0, 0), (0, Hp - H)))

    wih_r, wih_z, wih_n = jnp.split(w_ih, 3, axis=0)
    whh_r, whh_z, whh_n = jnp.split(w_hh, 3, axis=0)
    bih_r, bih_z, bih_n = jnp.split(b_ih, 3)
    bhh_r, bhh_z, bhh_n = jnp.split(b_hh, 3)

    w_ih_f = jnp.concatenate([col_block(wih_r), col_block(wih_z),
                              col_block(wih_n)], axis=1)           # (E, 3Hp)
    w_hh_f = jnp.concatenate([col_block(whh_r), col_block(whh_z),
                              col_block(whh_n)], axis=1)           # (H, 3Hp)
    w_hh_f = jnp.pad(w_hh_f, ((0, Hp - H), (0, 0)))                # (Hp, 3Hp)

    padv = lambda v: jnp.pad(v, (0, Hp - H))
    # r/z biases folded together; b_hh_n must stay inside r*(...) -> kept apart.
    b_x = jnp.concatenate([padv(bih_r + bhh_r), padv(bih_z + bhh_z),
                           padv(bih_n)])                           # (3Hp,)
    b_hn = padv(bhh_n).reshape(1, Hp)                              # (1, Hp)

    # ---- embedding + hoisted input projection (one big matmul in XLA, off
    #      the serial recurrence path). gx streamed to the kernel as bf16. ----
    embedded = emb_table[text]                                     # (T, B, E) f32
    gx = jnp.einsum("tbe,eg->tbg",
                    embedded.astype(jnp.bfloat16),
                    w_ih_f.astype(jnp.bfloat16),
                    preferred_element_type=jnp.float32) + b_x      # (T, B, 3Hp)
    gx = gx.astype(jnp.bfloat16)
    gx = jnp.pad(gx, ((0, Tp - T), (0, Bp - B), (0, 0)))           # (Tp, Bp, 3Hp)

    lens_flat = jnp.pad(text_lengths.astype(jnp.int32), (0, Bp - B))   # (Bp,)
    lens = lens_flat.reshape(Bp, 1)
    # per-batch-tile max length -> SMEM scalar prefetch (chunk skipping)
    maxlen_tile = jnp.max(lens_flat.reshape(n_btiles, B_TILE), axis=1)  # (n_btiles,)
    whh_bf16 = w_hh_f.astype(jnp.bfloat16)

    grid = (n_btiles, Tp // T_CHUNK)

    # VMEM budget (double-buffered pipelined blocks + scratch) with headroom;
    # capped at 32 MiB so it fits all generations incl. v7x's 64 MiB physical.
    vmem_need = (2 * T_CHUNK * B_TILE * G * 2       # gx blocks (bf16)
                 + 2 * T_CHUNK * B_TILE * Hp * 4    # out blocks (f32)
                 + 2 * Hp * G * 2                   # W_hh (constant index)
                 + 2 * Hp * 4                       # b_hn
                 + 2 * B_TILE * 128 * 4             # lens (lane-padded)
                 + 2 * B_TILE * Hp * 4              # hid output
                 + B_TILE * Hp * 4)                 # h scratch
    vmem_limit = int(min(max(2 * vmem_need, 4 << 20), 32 << 20))

    out_pad, hid_pad = pl.pallas_call(
        gru_kernel,
        out_shape=(
            jax.ShapeDtypeStruct((Tp, Bp, Hp), jnp.float32),   # time-major outputs
            jax.ShapeDtypeStruct((Bp, Hp), jnp.float32),       # final hidden
        ),
        grid_spec=pltpu.PrefetchScalarGridSpec(
            num_scalar_prefetch=1,                             # maxlen_tile -> SMEM
            grid=grid,
            in_specs=[
                pl.BlockSpec((T_CHUNK, B_TILE, G), lambda b, c, ml: (c, b, 0)),  # gx
                pl.BlockSpec((B_TILE, 1), lambda b, c, ml: (b, 0)),              # lens
                # NOTE: W_hh / b_hn block indices never change; single-buffering
                # (pl.Buffered(1)) skipped -- negligible VMEM at these sizes.
                pl.BlockSpec((Hp, G), lambda b, c, ml: (0, 0)),                  # W_hh
                pl.BlockSpec((1, Hp), lambda b, c, ml: (0, 0)),                  # b_hn
            ],
            out_specs=[
                pl.BlockSpec((T_CHUNK, B_TILE, Hp), lambda b, c, ml: (c, b, 0)),
                pl.BlockSpec((B_TILE, Hp), lambda b, c, ml: (b, 0)),
            ],
            scratch_shapes=[pltpu.VMEM((B_TILE, Hp), jnp.float32)],
        ),
        compiler_params=pltpu.CompilerParams(
            dimension_semantics=("parallel", "arbitrary"),
            vmem_limit_bytes=vmem_limit),
    )(maxlen_tile, gx, lens, whh_bf16, b_hn)

    # ---- epilogue in XLA: strip padding, one transpose to batch-first, and
    #      the tiny fc head (O=2, lane-sparse). Eval dropout == identity. -----
    hidden = hid_pad[:B, :H]                                   # (B, H)
    logits = hidden @ w_fc.T + b_fc                            # (B, O)
    output = jnp.transpose(out_pad[:T, :B, :H], (1, 0, 2))     # (B, T, H)
    return logits, output, text_lengths


def init_params(key, vocab_size, emb_dim, hidden_dim, output_dim, pad_idx):
    """Parameters in PyTorch layout (gate order r, z, n for GRU weights)."""
    ks = jax.random.split(key, 7)
    s = 0.1
    embedding = s * jax.random.normal(ks[0], (vocab_size, emb_dim), jnp.float32)
    embedding = embedding.at[pad_idx].set(0.0)         # padding_idx row = 0
    w_ih = s * jax.random.normal(ks[1], (3 * hidden_dim, emb_dim), jnp.float32)
    w_hh = s * jax.random.normal(ks[2], (3 * hidden_dim, hidden_dim), jnp.float32)
    b_ih = s * jax.random.normal(ks[3], (3 * hidden_dim,), jnp.float32)
    b_hh = s * jax.random.normal(ks[4], (3 * hidden_dim,), jnp.float32)
    w_fc = s * jax.random.normal(ks[5], (output_dim, hidden_dim), jnp.float32)
    b_fc = s * jax.random.normal(ks[6], (output_dim,), jnp.float32)
    return dict(embedding=embedding, w_ih=w_ih, w_hh=w_hh,
                b_ih=b_ih, b_hh=b_hh, w_fc=w_fc, b_fc=b_fc)


if __name__ == "__main__":
    VOCAB, EMB, HID, OUT = 100, 32, 32, 2
    PAD_IDX = 1
    T, B = 8, 8

    key = jax.random.PRNGKey(0)
    pkey, tkey = jax.random.split(key)
    params = init_params(pkey, VOCAB, EMB, HID, OUT, PAD_IDX)

    # lengths sorted descending (pack_padded_sequence enforce_sorted=True)
    text_lengths = jnp.array([8, 8, 7, 6, 5, 4, 3, 2], dtype=jnp.int32)
    text = jax.random.randint(tkey, (T, B), 2, VOCAB, dtype=jnp.int32)
    # put pad tokens past each sequence's length
    t_idx = jnp.arange(T)[:, None]
    text = jnp.where(t_idx < text_lengths[None, :], text, PAD_IDX)

    logits, output, output_lengths = jax.jit(rnn_forward)(text, text_lengths, params)
    jax.block_until_ready((logits, output, output_lengths))

    assert logits.shape == (B, OUT)
    assert output.shape == (B, T, HID)
    assert output_lengths.shape == (B,)
    print("KERNEL_OK")
</pallas_src>

<mosaic_0001>
module attributes {stable_mosaic.version = 11 : i64} {
  func.func @gru_kernel(%arg0: i32, %arg1: i32, %arg2: memref<1xi32, #tpu.memory_space<smem>>, %arg3: memref<8x8x384xbf16, #tpu.memory_space<vmem>>, %arg4: memref<8x1xi32, #tpu.memory_space<vmem>>, %arg5: memref<128x384xbf16, #tpu.memory_space<vmem>>, %arg6: memref<1x128xf32, #tpu.memory_space<vmem>>, %arg7: memref<8x8x128xf32, #tpu.memory_space<vmem>>, %arg8: memref<8x128xf32, #tpu.memory_space<vmem>>, %arg9: memref<8x128xf32, #tpu.memory_space<vmem>>) attributes {dimension_semantics = [#tpu.dimension_semantics<parallel>, #tpu.dimension_semantics<arbitrary>], iteration_bounds = array<i64: 1, 1>, scalar_prefetch = 1 : i64, scratch_operands = 1 : i64, tpu.core_type = #tpu.core_type<tc>, window_params = [{transform_indices = @transform_0, window_bounds = array<i64: 8, 8, 384>}, {transform_indices = @transform_1, window_bounds = array<i64: 8, 1>}, {pipeline_mode = #tpu.pipeline_mode<synchronous>, transform_indices = @transform_2, window_bounds = array<i64: 128, 384>}, {pipeline_mode = #tpu.pipeline_mode<synchronous>, transform_indices = @transform_3, window_bounds = array<i64: 1, 128>}, {transform_indices = @transform_4, window_bounds = array<i64: 8, 8, 128>}, {transform_indices = @transform_5, window_bounds = array<i64: 8, 128>}]} {
    %c8_i32 = arith.constant 8 : i32
    %0 = arith.muli %arg1, %c8_i32 : i32
    %c0_i32 = arith.constant 0 : i32
    %1 = arith.cmpi eq, %arg1, %c0_i32 : i32
    %2 = arith.extui %1 : i1 to i32
    %c0_i32_0 = arith.constant 0 : i32
    %3 = arith.cmpi ne, %2, %c0_i32_0 : i32
    scf.if %3 {
      %cst = arith.constant 0.000000e+00 : f32
      %15 = vector.broadcast %cst : f32 to vector<8x128xf32>
      %c0 = arith.constant 0 : index
      %c0_5 = arith.constant 0 : index
      %16 = vector.load %arg9[%c0, %c0_5] : memref<8x128xf32, #tpu.memory_space<vmem>>, vector<8x128xf32>
      tpu.vector_store %arg9[%c0, %c0_5], %15 {strides = array<i32>} : memref<8x128xf32, #tpu.memory_space<vmem>>, vector<8x128xf32>,
    } else {
    }
    %4 = arith.index_cast %arg0 : i32 to index
    %5 = memref.load %arg2[%4] : memref<1xi32, #tpu.memory_space<smem>>
    %6 = arith.cmpi slt, %0, %5 : i32
    %7 = arith.extui %6 : i1 to i32
    %c0_i32_1 = arith.constant 0 : i32
    %8 = arith.cmpi ne, %7, %c0_i32_1 : i32
    scf.if %8 {
      %c0 = arith.constant 0 : index
      %c0_5 = arith.constant 0 : index
      %15 = vector.load %arg5[%c0, %c0_5] : memref<128x384xbf16, #tpu.memory_space<vmem>>, vector<128x384xbf16>
      %c0_6 = arith.constant 0 : index
      %c0_7 = arith.constant 0 : index
      %16 = vector.load %arg6[%c0_6, %c0_7] : memref<1x128xf32, #tpu.memory_space<vmem>>, vector<1x128xf32>
      %17 = vector.shape_cast %16 : vector<1x128xf32> to vector<1x128xf32>
      %18 = vector.broadcast %17 : vector<1x128xf32> to vector<8x128xf32>
      %c0_8 = arith.constant 0 : index
      %c0_9 = arith.constant 0 : index
      %19 = vector.load %arg4[%c0_8, %c0_9] : memref<8x1xi32, #tpu.memory_space<vmem>>, vector<8x1xi32>
      %c0_10 = arith.constant 0 : index
      %c0_11 = arith.constant 0 : index
      %20 = vector.load %arg9[%c0_10, %c0_11] : memref<8x128xf32, #tpu.memory_space<vmem>>, vector<8x128xf32>
      %c0_12 = arith.constant 0 : index
      %c0_13 = arith.constant 0 : index
      %c0_14 = arith.constant 0 : index
      %21 = vector.load %arg3[%c0_12, %c0_13, %c0_14] : memref<8x8x384xbf16, #tpu.memory_space<vmem>>, vector<1x8x384xbf16>
      %22 = vector.shape_cast %21 : vector<1x8x384xbf16> to vector<8x384xbf16>
      %23 = arith.truncf %20 : vector<8x128xf32> to vector<8x128xbf16>
      %cst = arith.constant dense<0.000000e+00> : vector<8x384xf32>
      %24 = tpu.matmul %23, %15, %cst {dimension_numbers = #tpu.dot_dimension_numbers<[1], [0], [0], [1], [0, 0, 1, 1], [], []>} : vector<8x128xbf16>, vector<128x384xbf16>, vector<8x384xf32> -> vector<8x384xf32>
      %25 = vector.extract_strided_slice %22 {offsets = [0, 0], sizes = [8, 128], strides = [1, 1]} : vector<8x384xbf16> to vector<8x128xbf16>
      %26 = arith.extf %25 : vector<8x128xbf16> to vector<8x128xf32>
      %27 = vector.extract_strided_slice %24 {offsets = [0, 0], sizes = [8, 128], strides = [1, 1]} : vector<8x384xf32> to vector<8x128xf32>
      %28 = arith.addf %26, %27 : vector<8x128xf32>
      %cst_15 = arith.constant 5.000000e-01 : f32
      %29 = vector.broadcast %cst_15 : f32 to vector<8x128xf32>
      %30 = arith.mulf %29, %28 : vector<8x128xf32>
      %31 = math.tanh %30 : vector<8x128xf32>
      %cst_16 = arith.constant 5.000000e-01 : f32
      %32 = vector.broadcast %cst_16 : f32 to vector<8x128xf32>
      %33 = arith.mulf %32, %31 : vector<8x128xf32>
      %cst_17 = arith.constant 5.000000e-01 : f32
      %34 = vector.broadcast %cst_17 : f32 to vector<8x128xf32>
      %35 = arith.addf %33, %34 : vector<8x128xf32>
      %36 = vector.extract_strided_slice %22 {offsets = [0, 128], sizes = [8, 128], strides = [1, 1]} : vector<8x384xbf16> to vector<8x128xbf16>
      %37 = arith.extf %36 : vector<8x128xbf16> to vector<8x128xf32>
      %38 = vector.extract_strided_slice %24 {offsets = [0, 128], sizes = [8, 128], strides = [1, 1]} : vector<8x384xf32> to vector<8x128xf32>
      %39 = arith.addf %37, %38 : vector<8x128xf32>
      %cst_18 = arith.constant 5.000000e-01 : f32
      %40 = vector.broadcast %cst_18 : f32 to vector<8x128xf32>
      %41 = arith.mulf %40, %39 : vector<8x128xf32>
      %42 = math.tanh %41 : vector<8x128xf32>
      %cst_19 = arith.constant 5.000000e-01 : f32
      %43 = vector.broadcast %cst_19 : f32 to vector<8x128xf32>
      %44 = arith.mulf %43, %42 : vector<8x128xf32>
      %cst_20 = arith.constant 5.000000e-01 : f32
      %45 = vector.broadcast %cst_20 : f32 to vector<8x128xf32>
      %46 = arith.addf %44, %45 : vector<8x128xf32>
      %47 = vector.extract_strided_slice %22 {offsets = [0, 256], sizes = [8, 128], strides = [1, 1]} : vector<8x384xbf16> to vector<8x128xbf16>
      %48 = arith.extf %47 : vector<8x128xbf16> to vector<8x128xf32>
      %49 = vector.extract_strided_slice %24 {offsets = [0, 256], sizes = [8, 128], strides = [1, 1]} : vector<8x384xf32> to vector<8x128xf32>
      %50 = arith.addf %49, %18 : vector<8x128xf32>
      %51 = arith.mulf %35, %50 : vector<8x128xf32>
      %52 = arith.addf %48, %51 : vector<8x128xf32>
      %53 = math.tanh %52 : vector<8x128xf32>
      %cst_21 = arith.constant 1.000000e+00 : f32
      %54 = vector.broadcast %cst_21 : f32 to vector<8x128xf32>
      %55 = arith.subf %54, %46 : vector<8x128xf32>
      %56 = arith.mulf %55, %53 : vector<8x128xf32>
      %57 = arith.mulf %46, %20 : vector<8x128xf32>
      %58 = arith.addf %56, %57 : vector<8x128xf32>
      %c0_i32_22 = arith.constant 0 : i32
      %59 = arith.addi %0, %c0_i32_22 : i32
      %60 = vector.broadcast %59 : i32 to vector<8x1xi32>
      %61 = arith.cmpi sgt, %19, %60 : vector<8x1xi32>
      %cst_23 = arith.constant 0.000000e+00 : f32
      %62 = vector.shape_cast %61 : vector<8x1xi1> to vector<8x1xi1>
      %63 = vector.broadcast %62 : vector<8x1xi1> to vector<8x128xi1>
      %64 = vector.broadcast %cst_23 : f32 to vector<8x128xf32>
      %65 = arith.select %63, %58, %64 : vector<8x128xi1>, vector<8x128xf32>
      %c0_24 = arith.constant 0 : index
      %c0_25 = arith.constant 0 : index
      %c0_26 = arith.constant 0 : index
      %66 = vector.load %arg7[%c0_24, %c0_25, %c0_26] : memref<8x8x128xf32, #tpu.memory_space<vmem>>, vector<1x8x128xf32>
      %67 = vector.shape_cast %66 : vector<1x8x128xf32> to vector<8x128xf32>
      %68 = vector.shape_cast %65 : vector<8x128xf32> to vector<1x8x128xf32>
      tpu.vector_store %arg7[%c0_24, %c0_25, %c0_26], %68 {strides = array<i32>} : memref<8x8x128xf32, #tpu.memory_space<vmem>>, vector<1x8x128xf32>,
      %69 = vector.shape_cast %61 : vector<8x1xi1> to vector<8x1xi1>
      %70 = vector.broadcast %69 : vector<8x1xi1> to vector<8x128xi1>
      %71 = arith.select %70, %58, %20 : vector<8x128xi1>, vector<8x128xf32>
      %c1 = arith.constant 1 : index
      %c0_27 = arith.constant 0 : index
      %c0_28 = arith.constant 0 : index
      %72 = vector.load %arg3[%c1, %c0_27, %c0_28] : memref<8x8x384xbf16, #tpu.memory_space<vmem>>, vector<1x8x384xbf16>
      %73 = vector.shape_cast %72 : vector<1x8x384xbf16> to vector<8x384xbf16>
      %74 = arith.truncf %71 : vector<8x128xf32> to vector<8x128xbf16>
      %cst_29 = arith.constant dense<0.000000e+00> : vector<8x384xf32>
      %75 = tpu.matmul %74, %15, %cst_29 {dimension_numbers = #tpu.dot_dimension_numbers<[1], [0], [0], [1], [0, 0, 1, 1], [], []>} : vector<8x128xbf16>, vector<128x384xbf16>, vector<8x384xf32> -> vector<8x384xf32>
      %76 = vector.extract_strided_slice %73 {offsets = [0, 0], sizes = [8, 128], strides = [1, 1]} : vector<8x384xbf16> to vector<8x128xbf16>
      %77 = arith.extf %76 : vector<8x128xbf16> to vector<8x128xf32>
      %78 = vector.extract_strided_slice %75 {offsets = [0, 0], sizes = [8, 128], strides = [1, 1]} : vector<8x384xf32> to vector<8x128xf32>
      %79 = arith.addf %77, %78 : vector<8x128xf32>
      %cst_30 = arith.constant 5.000000e-01 : f32
      %80 = vector.broadcast %cst_30 : f32 to vector<8x128xf32>
      %81 = arith.mulf %80, %79 : vector<8x128xf32>
      %82 = math.tanh %81 : vector<8x128xf32>
      %cst_31 = arith.constant 5.000000e-01 : f32
      %83 = vector.broadcast %cst_31 : f32 to vector<8x128xf32>
      %84 = arith.mulf %83, %82 : vector<8x128xf32>
      %cst_32 = arith.constant 5.000000e-01 : f32
      %85 = vector.broadcast %cst_32 : f32 to vector<8x128xf32>
      %86 = arith.addf %84, %85 : vector<8x128xf32>
      %87 = vector.extract_strided_slice %73 {offsets = [0, 128], sizes = [8, 128], strides = [1, 1]} : vector<8x384xbf16> to vector<8x128xbf16>
      %88 = arith.extf %87 : vector<8x128xbf16> to vector<8x128xf32>
      %89 = vector.extract_strided_slice %75 {offsets = [0, 128], sizes = [8, 128], strides = [1, 1]} : vector<8x384xf32> to vector<8x128xf32>
      %90 = arith.addf %88, %89 : vector<8x128xf32>
      %cst_33 = arith.constant 5.000000e-01 : f32
      %91 = vector.broadcast %cst_33 : f32 to vector<8x128xf32>
      %92 = arith.mulf %91, %90 : vector<8x128xf32>
      %93 = math.tanh %92 : vector<8x128xf32>
      %cst_34 = arith.constant 5.000000e-01 : f32
      %94 = vector.broadcast %cst_34 : f32 to vector<8x128xf32>
      %95 = arith.mulf %94, %93 : vector<8x128xf32>
      %cst_35 = arith.constant 5.000000e-01 : f32
      %96 = vector.broadcast %cst_35 : f32 to vector<8x128xf32>
      %97 = arith.addf %95, %96 : vector<8x128xf32>
      %98 = vector.extract_strided_slice %73 {offsets = [0, 256], sizes = [8, 128], strides = [1, 1]} : vector<8x384xbf16> to vector<8x128xbf16>
      %99 = arith.extf %98 : vector<8x128xbf16> to vector<8x128xf32>
      %100 = vector.extract_strided_slice %75 {offsets = [0, 256], sizes = [8, 128], strides = [1, 1]} : vector<8x384xf32> to vector<8x128xf32>
      %101 = arith.addf %100, %18 : vector<8x128xf32>
      %102 = arith.mulf %86, %101 : vector<8x128xf32>
      %103 = arith.addf %99, %102 : vector<8x128xf32>
      %104 = math.tanh %103 : vector<8x128xf32>
      %cst_36 = arith.constant 1.000000e+00 : f32
      %105 = vector.broadcast %cst_36 : f32 to vector<8x128xf32>
      %106 = arith.subf %105, %97 : vector<8x128xf32>
      %107 = arith.mulf %106, %104 : vector<8x128xf32>
      %108 = arith.mulf %97, %71 : vector<8x128xf32>
      %109 = arith.addf %107, %108 : vector<8x128xf32>
      %c1_i32 = arith.constant 1 : i32
      %110 = arith.addi %0, %c1_i32 : i32
      %111 = vector.broadcast %110 : i32 to vector<8x1xi32>
      %112 = arith.cmpi sgt, %19, %111 : vector<8x1xi32>
      %cst_37 = arith.constant 0.000000e+00 : f32
      %113 = vector.shape_cast %112 : vector<8x1xi1> to vector<8x1xi1>
      %114 = vector.broadcast %113 : vector<8x1xi1> to vector<8x128xi1>
      %115 = vector.broadcast %cst_37 : f32 to vector<8x128xf32>
      %116 = arith.select %114, %109, %115 : vector<8x128xi1>, vector<8x128xf32>
      %c1_38 = arith.constant 1 : index
      %c0_39 = arith.constant 0 : index
      %c0_40 = arith.constant 0 : index
      %117 = vector.load %arg7[%c1_38, %c0_39, %c0_40] : memref<8x8x128xf32, #tpu.memory_space<vmem>>, vector<1x8x128xf32>
      %118 = vector.shape_cast %117 : vector<1x8x128xf32> to vector<8x128xf32>
      %119 = vector.shape_cast %116 : vector<8x128xf32> to vector<1x8x128xf32>
      tpu.vector_store %arg7[%c1_38, %c0_39, %c0_40], %119 {strides = array<i32>} : memref<8x8x128xf32, #tpu.memory_space<vmem>>, vector<1x8x128xf32>,
      %120 = vector.shape_cast %112 : vector<8x1xi1> to vector<8x1xi1>
      %121 = vector.broadcast %120 : vector<8x1xi1> to vector<8x128xi1>
      %122 = arith.select %121, %109, %71 : vector<8x128xi1>, vector<8x128xf32>
      %c2 = arith.constant 2 : index
      %c0_41 = arith.constant 0 : index
      %c0_42 = arith.constant 0 : index
      %123 = vector.load %arg3[%c2, %c0_41, %c0_42] : memref<8x8x384xbf16, #tpu.memory_space<vmem>>, vector<1x8x384xbf16>
      %124 = vector.shape_cast %123 : vector<1x8x384xbf16> to vector<8x384xbf16>
      %125 = arith.truncf %122 : vector<8x128xf32> to vector<8x128xbf16>
      %cst_43 = arith.constant dense<0.000000e+00> : vector<8x384xf32>
      %126 = tpu.matmul %125, %15, %cst_43 {dimension_numbers = #tpu.dot_dimension_numbers<[1], [0], [0], [1], [0, 0, 1, 1], [], []>} : vector<8x128xbf16>, vector<128x384xbf16>, vector<8x384xf32> -> vector<8x384xf32>
      %127 = vector.extract_strided_slice %124 {offsets = [0, 0], sizes = [8, 128], strides = [1, 1]} : vector<8x384xbf16> to vector<8x128xbf16>
      %128 = arith.extf %127 : vector<8x128xbf16> to vector<8x128xf32>
      %129 = vector.extract_strided_slice %126 {offsets = [0, 0], sizes = [8, 128], strides = [1, 1]} : vector<8x384xf32> to vector<8x128xf32>
      %130 = arith.addf %128, %129 : vector<8x128xf32>
      %cst_44 = arith.constant 5.000000e-01 : f32
      %131 = vector.broadcast %cst_44 : f32 to vector<8x128xf32>
      %132 = arith.mulf %131, %130 : vector<8x128xf32>
      %133 = math.tanh %132 : vector<8x128xf32>
      %cst_45 = arith.constant 5.000000e-01 : f32
      %134 = vector.broadcast %cst_45 : f32 to vector<8x128xf32>
      %135 = arith.mulf %134, %133 : vector<8x128xf32>
      %cst_46 = arith.constant 5.000000e-01 : f32
      %136 = vector.broadcast %cst_46 : f32 to vector<8x128xf32>
      %137 = arith.addf %135, %136 : vector<8x128xf32>
      %138 = vector.extract_strided_slice %124 {offsets = [0, 128], sizes = [8, 128], strides = [1, 1]} : vector<8x384xbf16> to vector<8x128xbf16>
      %139 = arith.extf %138 : vector<8x128xbf16> to vector<8x128xf32>
      %140 = vector.extract_strided_slice %126 {offsets = [0, 128], sizes = [8, 128], strides = [1, 1]} : vector<8x384xf32> to vector<8x128xf32>
      %141 = arith.addf %139, %140 : vector<8x128xf32>
      %cst_47 = arith.constant 5.000000e-01 : f32
      %142 = vector.broadcast %cst_47 : f32 to vector<8x128xf32>
      %143 = arith.mulf %142, %141 : vector<8x128xf32>
      %144 = math.tanh %143 : vector<8x128xf32>
      %cst_48 = arith.constant 5.000000e-01 : f32
      %145 = vector.broadcast %cst_48 : f32 to vector<8x128xf32>
      %146 = arith.mulf %145, %144 : vector<8x128xf32>
      %cst_49 = arith.constant 5.000000e-01 : f32
      %147 = vector.broadcast %cst_49 : f32 to vector<8x128xf32>
      %148 = arith.addf %146, %147 : vector<8x128xf32>
      %149 = vector.extract_strided_slice %124 {offsets = [0, 256], sizes = [8, 128], strides = [1, 1]} : vector<8x384xbf16> to vector<8x128xbf16>
      %150 = arith.extf %149 : vector<8x128xbf16> to vector<8x128xf32>
      %151 = vector.extract_strided_slice %126 {offsets = [0, 256], sizes = [8, 128], strides = [1, 1]} : vector<8x384xf32> to vector<8x128xf32>
      %152 = arith.addf %151, %18 : vector<8x128xf32>
      %153 = arith.mulf %137, %152 : vector<8x128xf32>
      %154 = arith.addf %150, %153 : vector<8x128xf32>
      %155 = math.tanh %154 : vector<8x128xf32>
      %cst_50 = arith.constant 1.000000e+00 : f32
      %156 = vector.broadcast %cst_50 : f32 to vector<8x128xf32>
      %157 = arith.subf %156, %148 : vector<8x128xf32>
      %158 = arith.mulf %157, %155 : vector<8x128xf32>
      %159 = arith.mulf %148, %122 : vector<8x128xf32>
      %160 = arith.addf %158, %159 : vector<8x128xf32>
      %c2_i32 = arith.constant 2 : i32
      %161 = arith.addi %0, %c2_i32 : i32
      %162 = vector.broadcast %161 : i32 to vector<8x1xi32>
      %163 = arith.cmpi sgt, %19, %162 : vector<8x1xi32>
      %cst_51 = arith.constant 0.000000e+00 : f32
      %164 = vector.shape_cast %163 : vector<8x1xi1> to vector<8x1xi1>
      %165 = vector.broadcast %164 : vector<8x1xi1> to vector<8x128xi1>
      %166 = vector.broadcast %cst_51 : f32 to vector<8x128xf32>
      %167 = arith.select %165, %160, %166 : vector<8x128xi1>, vector<8x128xf32>
      %c2_52 = arith.constant 2 : index
      %c0_53 = arith.constant 0 : index
      %c0_54 = arith.constant 0 : index
      %168 = vector.load %arg7[%c2_52, %c0_53, %c0_54] : memref<8x8x128xf32, #tpu.memory_space<vmem>>, vector<1x8x128xf32>
      %169 = vector.shape_cast %168 : vector<1x8x128xf32> to vector<8x128xf32>
      %170 = vector.shape_cast %167 : vector<8x128xf32> to vector<1x8x128xf32>
      tpu.vector_store %arg7[%c2_52, %c0_53, %c0_54], %170 {strides = array<i32>} : memref<8x8x128xf32, #tpu.memory_space<vmem>>, vector<1x8x128xf32>,
      %171 = vector.shape_cast %163 : vector<8x1xi1> to vector<8x1xi1>
      %172 = vector.broadcast %171 : vector<8x1xi1> to vector<8x128xi1>
      %173 = arith.select %172, %160, %122 : vector<8x128xi1>, vector<8x128xf32>
      %c3 = arith.constant 3 : index
      %c0_55 = arith.constant 0 : index
      %c0_56 = arith.constant 0 : index
      %174 = vector.load %arg3[%c3, %c0_55, %c0_56] : memref<8x8x384xbf16, #tpu.memory_space<vmem>>, vector<1x8x384xbf16>
      %175 = vector.shape_cast %174 : vector<1x8x384xbf16> to vector<8x384xbf16>
      %176 = arith.truncf %173 : vector<8x128xf32> to vector<8x128xbf16>
      %cst_57 = arith.constant dense<0.000000e+00> : vector<8x384xf32>
      %177 = tpu.matmul %176, %15, %cst_57 {dimension_numbers = #tpu.dot_dimension_numbers<[1], [0], [0], [1], [0, 0, 1, 1], [], []>} : vector<8x128xbf16>, vector<128x384xbf16>, vector<8x384xf32> -> vector<8x384xf32>
      %178 = vector.extract_strided_slice %175 {offsets = [0, 0], sizes = [8, 128], strides = [1, 1]} : vector<8x384xbf16> to vector<8x128xbf16>
      %179 = arith.extf %178 : vector<8x128xbf16> to vector<8x128xf32>
      %180 = vector.extract_strided_slice %177 {offsets = [0, 0], sizes = [8, 128], strides = [1, 1]} : vector<8x384xf32> to vector<8x128xf32>
      %181 = arith.addf %179, %180 : vector<8x128xf32>
      %cst_58 = arith.constant 5.000000e-01 : f32
      %182 = vector.broadcast %cst_58 : f32 to vector<8x128xf32>
      %183 = arith.mulf %182, %181 : vector<8x128xf32>
      %184 = math.tanh %183 : vector<8x128xf32>
      %cst_59 = arith.constant 5.000000e-01 : f32
      %185 = vector.broadcast %cst_59 : f32 to vector<8x128xf32>
      %186 = arith.mulf %185, %184 : vector<8x128xf32>
      %cst_60 = arith.constant 5.000000e-01 : f32
      %187 = vector.broadcast %cst_60 : f32 to vector<8x128xf32>
      %188 = arith.addf %186, %187 : vector<8x128xf32>
      %189 = vector.extract_strided_slice %175 {offsets = [0, 128], sizes = [8, 128], strides = [1, 1]} : vector<8x384xbf16> to vector<8x128xbf16>
      %190 = arith.extf %189 : vector<8x128xbf16> to vector<8x128xf32>
      %191 = vector.extract_strided_slice %177 {offsets = [0, 128], sizes = [8, 128], strides = [1, 1]} : vector<8x384xf32> to vector<8x128xf32>
      %192 = arith.addf %190, %191 : vector<8x128xf32>
      %cst_61 = arith.constant 5.000000e-01 : f32
      %193 = vector.broadcast %cst_61 : f32 to vector<8x128xf32>
      %194 = arith.mulf %193, %192 : vector<8x128xf32>
      %195 = math.tanh %194 : vector<8x128xf32>
      %cst_62 = arith.constant 5.000000e-01 : f32
      %196 = vector.broadcast %cst_62 : f32 to vector<8x128xf32>
      %197 = arith.mulf %196, %195 : vector<8x128xf32>
      %cst_63 = arith.constant 5.000000e-01 : f32
      %198 = vector.broadcast %cst_63 : f32 to vector<8x128xf32>
      %199 = arith.addf %197, %198 : vector<8x128xf32>
      %200 = vector.extract_strided_slice %175 {offsets = [0, 256], sizes = [8, 128], strides = [1, 1]} : vector<8x384xbf16> to vector<8x128xbf16>
      %201 = arith.extf %200 : vector<8x128xbf16> to vector<8x128xf32>
      %202 = vector.extract_strided_slice %177 {offsets = [0, 256], sizes = [8, 128], strides = [1, 1]} : vector<8x384xf32> to vector<8x128xf32>
      %203 = arith.addf %202, %18 : vector<8x128xf32>
      %204 = arith.mulf %188, %203 : vector<8x128xf32>
      %205 = arith.addf %201, %204 : vector<8x128xf32>
      %206 = math.tanh %205 : vector<8x128xf32>
      %cst_64 = arith.constant 1.000000e+00 : f32
      %207 = vector.broadcast %cst_64 : f32 to vector<8x128xf32>
      %208 = arith.subf %207, %199 : vector<8x128xf32>
      %209 = arith.mulf %208, %206 : vector<8x128xf32>
      %210 = arith.mulf %199, %173 : vector<8x128xf32>
      %211 = arith.addf %209, %210 : vector<8x128xf32>
      %c3_i32 = arith.constant 3 : i32
      %212 = arith.addi %0, %c3_i32 : i32
      %213 = vector.broadcast %212 : i32 to vector<8x1xi32>
      %214 = arith.cmpi sgt, %19, %213 : vector<8x1xi32>
      %cst_65 = arith.constant 0.000000e+00 : f32
      %215 = vector.shape_cast %214 : vector<8x1xi1> to vector<8x1xi1>
      %216 = vector.broadcast %215 : vector<8x1xi1> to vector<8x128xi1>
      %217 = vector.broadcast %cst_65 : f32 to vector<8x128xf32>
      %218 = arith.select %216, %211, %217 : vector<8x128xi1>, vector<8x128xf32>
      %c3_66 = arith.constant 3 : index
      %c0_67 = arith.constant 0 : index
      %c0_68 = arith.constant 0 : index
      %219 = vector.load %arg7[%c3_66, %c0_67, %c0_68] : memref<8x8x128xf32, #tpu.memory_space<vmem>>, vector<1x8x128xf32>
      %220 = vector.shape_cast %219 : vector<1x8x128xf32> to vector<8x128xf32>
      %221 = vector.shape_cast %218 : vector<8x128xf32> to vector<1x8x128xf32>
      tpu.vector_store %arg7[%c3_66, %c0_67, %c0_68], %221 {strides = array<i32>} : memref<8x8x128xf32, #tpu.memory_space<vmem>>, vector<1x8x128xf32>,
      %222 = vector.shape_cast %214 : vector<8x1xi1> to vector<8x1xi1>
      %223 = vector.broadcast %222 : vector<8x1xi1> to vector<8x128xi1>
      %224 = arith.select %223, %211, %173 : vector<8x128xi1>, vector<8x128xf32>
      %c4 = arith.constant 4 : index
      %c0_69 = arith.constant 0 : index
      %c0_70 = arith.constant 0 : index
      %225 = vector.load %arg3[%c4, %c0_69, %c0_70] : memref<8x8x384xbf16, #tpu.memory_space<vmem>>, vector<1x8x384xbf16>
      %226 = vector.shape_cast %225 : vector<1x8x384xbf16> to vector<8x384xbf16>
      %227 = arith.truncf %224 : vector<8x128xf32> to vector<8x128xbf16>
      %cst_71 = arith.constant dense<0.000000e+00> : vector<8x384xf32>
      %228 = tpu.matmul %227, %15, %cst_71 {dimension_numbers = #tpu.dot_dimension_numbers<[1], [0], [0], [1], [0, 0, 1, 1], [], []>} : vector<8x128xbf16>, vector<128x384xbf16>, vector<8x384xf32> -> vector<8x384xf32>
      %229 = vector.extract_strided_slice %226 {offsets = [0, 0], sizes = [8, 128], strides = [1, 1]} : vector<8x384xbf16> to vector<8x128xbf16>
      %230 = arith.extf %229 : vector<8x128xbf16> to vector<8x128xf32>
      %231 = vector.extract_strided_slice %228 {offsets = [0, 0], sizes = [8, 128], strides = [1, 1]} : vector<8x384xf32> to vector<8x128xf32>
      %232 = arith.addf %230, %231 : vector<8x128xf32>
      %cst_72 = arith.constant 5.000000e-01 : f32
      %233 = vector.broadcast %cst_72 : f32 to vector<8x128xf32>
      %234 = arith.mulf %233, %232 : vector<8x128xf32>
      %235 = math.tanh %234 : vector<8x128xf32>
      %cst_73 = arith.constant 5.000000e-01 : f32
      %236 = vector.broadcast %cst_73 : f32 to vector<8x128xf32>
      %237 = arith.mulf %236, %235 : vector<8x128xf32>
      %cst_74 = arith.constant 5.000000e-01 : f32
      %238 = vector.broadcast %cst_74 : f32 to vector<8x128xf32>
      %239 = arith.addf %237, %238 : vector<8x128xf32>
      %240 = vector.extract_strided_slice %226 {offsets = [0, 128], sizes = [8, 128], strides = [1, 1]} : vector<8x384xbf16> to vector<8x128xbf16>
      %241 = arith.extf %240 : vector<8x128xbf16> to vector<8x128xf32>
      %242 = vector.extract_strided_slice %228 {offsets = [0, 128], sizes = [8, 128], strides = [1, 1]} : vector<8x384xf32> to vector<8x128xf32>
      %243 = arith.addf %241, %242 : vector<8x128xf32>
      %cst_75 = arith.constant 5.000000e-01 : f32
      %244 = vector.broadcast %cst_75 : f32 to vector<8x128xf32>
      %245 = arith.mulf %244, %243 : vector<8x128xf32>
      %246 = math.tanh %245 : vector<8x128xf32>
      %cst_76 = arith.constant 5.000000e-01 : f32
      %247 = vector.broadcast %cst_76 : f32 to vector<8x128xf32>
      %248 = arith.mulf %247, %246 : vector<8x128xf32>
      %cst_77 = arith.constant 5.000000e-01 : f32
      %249 = vector.broadcast %cst_77 : f32 to vector<8x128xf32>
      %250 = arith.addf %248, %249 : vector<8x128xf32>
      %251 = vector.extract_strided_slice %226 {offsets = [0, 256], sizes = [8, 128], strides = [1, 1]} : vector<8x384xbf16> to vector<8x128xbf16>
      %252 = arith.extf %251 : vector<8x128xbf16> to vector<8x128xf32>
      %253 = vector.extract_strided_slice %228 {offsets = [0, 256], sizes = [8, 128], strides = [1, 1]} : vector<8x384xf32> to vector<8x128xf32>
      %254 = arith.addf %253, %18 : vector<8x128xf32>
      %255 = arith.mulf %239, %254 : vector<8x128xf32>
      %256 = arith.addf %252, %255 : vector<8x128xf32>
      %257 = math.tanh %256 : vector<8x128xf32>
      %cst_78 = arith.constant 1.000000e+00 : f32
      %258 = vector.broadcast %cst_78 : f32 to vector<8x128xf32>
      %259 = arith.subf %258, %250 : vector<8x128xf32>
      %260 = arith.mulf %259, %257 : vector<8x128xf32>
      %261 = arith.mulf %250, %224 : vector<8x128xf32>
      %262 = arith.addf %260, %261 : vector<8x128xf32>
      %c4_i32 = arith.constant 4 : i32
      %263 = arith.addi %0, %c4_i32 : i32
      %264 = vector.broadcast %263 : i32 to vector<8x1xi32>
      %265 = arith.cmpi sgt, %19, %264 : vector<8x1xi32>
      %cst_79 = arith.constant 0.000000e+00 : f32
      %266 = vector.shape_cast %265 : vector<8x1xi1> to vector<8x1xi1>
      %267 = vector.broadcast %266 : vector<8x1xi1> to vector<8x128xi1>
      %268 = vector.broadcast %cst_79 : f32 to vector<8x128xf32>
      %269 = arith.select %267, %262, %268 : vector<8x128xi1>, vector<8x128xf32>
      %c4_80 = arith.constant 4 : index
      %c0_81 = arith.constant 0 : index
      %c0_82 = arith.constant 0 : index
      %270 = vector.load %arg7[%c4_80, %c0_81, %c0_82] : memref<8x8x128xf32, #tpu.memory_space<vmem>>, vector<1x8x128xf32>
      %271 = vector.shape_cast %270 : vector<1x8x128xf32> to vector<8x128xf32>
      %272 = vector.shape_cast %269 : vector<8x128xf32> to vector<1x8x128xf32>
      tpu.vector_store %arg7[%c4_80, %c0_81, %c0_82], %272 {strides = array<i32>} : memref<8x8x128xf32, #tpu.memory_space<vmem>>, vector<1x8x128xf32>,
      %273 = vector.shape_cast %265 : vector<8x1xi1> to vector<8x1xi1>
      %274 = vector.broadcast %273 : vector<8x1xi1> to vector<8x128xi1>
      %275 = arith.select %274, %262, %224 : vector<8x128xi1>, vector<8x128xf32>
      %c5 = arith.constant 5 : index
      %c0_83 = arith.constant 0 : index
      %c0_84 = arith.constant 0 : index
      %276 = vector.load %arg3[%c5, %c0_83, %c0_84] : memref<8x8x384xbf16, #tpu.memory_space<vmem>>, vector<1x8x384xbf16>
      %277 = vector.shape_cast %276 : vector<1x8x384xbf16> to vector<8x384xbf16>
      %278 = arith.truncf %275 : vector<8x128xf32> to vector<8x128xbf16>
      %cst_85 = arith.constant dense<0.000000e+00> : vector<8x384xf32>
      %279 = tpu.matmul %278, %15, %cst_85 {dimension_numbers = #tpu.dot_dimension_numbers<[1], [0], [0], [1], [0, 0, 1, 1], [], []>} : vector<8x128xbf16>, vector<128x384xbf16>, vector<8x384xf32> -> vector<8x384xf32>
      %280 = vector.extract_strided_slice %277 {offsets = [0, 0], sizes = [8, 128], strides = [1, 1]} : vector<8x384xbf16> to vector<8x128xbf16>
      %281 = arith.extf %280 : vector<8x128xbf16> to vector<8x128xf32>
      %282 = vector.extract_strided_slice %279 {offsets = [0, 0], sizes = [8, 128], strides = [1, 1]} : vector<8x384xf32> to vector<8x128xf32>
      %283 = arith.addf %281, %282 : vector<8x128xf32>
      %cst_86 = arith.constant 5.000000e-01 : f32
      %284 = vector.broadcast %cst_86 : f32 to vector<8x128xf32>
      %285 = arith.mulf %284, %283 : vector<8x128xf32>
      %286 = math.tanh %285 : vector<8x128xf32>
      %cst_87 = arith.constant 5.000000e-01 : f32
      %287 = vector.broadcast %cst_87 : f32 to vector<8x128xf32>
      %288 = arith.mulf %287, %286 : vector<8x128xf32>
      %cst_88 = arith.constant 5.000000e-01 : f32
      %289 = vector.broadcast %cst_88 : f32 to vector<8x128xf32>
      %290 = arith.addf %288, %289 : vector<8x128xf32>
      %291 = vector.extract_strided_slice %277 {offsets = [0, 128], sizes = [8, 128], strides = [1, 1]} : vector<8x384xbf16> to vector<8x128xbf16>
      %292 = arith.extf %291 : vector<8x128xbf16> to vector<8x128xf32>
      %293 = vector.extract_strided_slice %279 {offsets = [0, 128], sizes = [8, 128], strides = [1, 1]} : vector<8x384xf32> to vector<8x128xf32>
      %294 = arith.addf %292, %293 : vector<8x128xf32>
      %cst_89 = arith.constant 5.000000e-01 : f32
      %295 = vector.broadcast %cst_89 : f32 to vector<8x128xf32>
      %296 = arith.mulf %295, %294 : vector<8x128xf32>
      %297 = math.tanh %296 : vector<8x128xf32>
      %cst_90 = arith.constant 5.000000e-01 : f32
      %298 = vector.broadcast %cst_90 : f32 to vector<8x128xf32>
      %299 = arith.mulf %298, %297 : vector<8x128xf32>
      %cst_91 = arith.constant 5.000000e-01 : f32
      %300 = vector.broadcast %cst_91 : f32 to vector<8x128xf32>
      %301 = arith.addf %299, %300 : vector<8x128xf32>
      %302 = vector.extract_strided_slice %277 {offsets = [0, 256], sizes = [8, 128], strides = [1, 1]} : vector<8x384xbf16> to vector<8x128xbf16>
      %303 = arith.extf %302 : vector<8x128xbf16> to vector<8x128xf32>
      %304 = vector.extract_strided_slice %279 {offsets = [0, 256], sizes = [8, 128], strides = [1, 1]} : vector<8x384xf32> to vector<8x128xf32>
      %305 = arith.addf %304, %18 : vector<8x128xf32>
      %306 = arith.mulf %290, %305 : vector<8x128xf32>
      %307 = arith.addf %303, %306 : vector<8x128xf32>
      %308 = math.tanh %307 : vector<8x128xf32>
      %cst_92 = arith.constant 1.000000e+00 : f32
      %309 = vector.broadcast %cst_92 : f32 to vector<8x128xf32>
      %310 = arith.subf %309, %301 : vector<8x128xf32>
      %311 = arith.mulf %310, %308 : vector<8x128xf32>
      %312 = arith.mulf %301, %275 : vector<8x128xf32>
      %313 = arith.addf %311, %312 : vector<8x128xf32>
      %c5_i32 = arith.constant 5 : i32
      %314 = arith.addi %0, %c5_i32 : i32
      %315 = vector.broadcast %314 : i32 to vector<8x1xi32>
      %316 = arith.cmpi sgt, %19, %315 : vector<8x1xi32>
      %cst_93 = arith.constant 0.000000e+00 : f32
      %317 = vector.shape_cast %316 : vector<8x1xi1> to vector<8x1xi1>
      %318 = vector.broadcast %317 : vector<8x1xi1> to vector<8x128xi1>
      %319 = vector.broadcast %cst_93 : f32 to vector<8x128xf32>
      %320 = arith.select %318, %313, %319 : vector<8x128xi1>, vector<8x128xf32>
      %c5_94 = arith.constant 5 : index
      %c0_95 = arith.constant 0 : index
      %c0_96 = arith.constant 0 : index
      %321 = vector.load %arg7[%c5_94, %c0_95, %c0_96] : memref<8x8x128xf32, #tpu.memory_space<vmem>>, vector<1x8x128xf32>
      %322 = vector.shape_cast %321 : vector<1x8x128xf32> to vector<8x128xf32>
      %323 = vector.shape_cast %320 : vector<8x128xf32> to vector<1x8x128xf32>
      tpu.vector_store %arg7[%c5_94, %c0_95, %c0_96], %323 {strides = array<i32>} : memref<8x8x128xf32, #tpu.memory_space<vmem>>, vector<1x8x128xf32>,
      %324 = vector.shape_cast %316 : vector<8x1xi1> to vector<8x1xi1>
      %325 = vector.broadcast %324 : vector<8x1xi1> to vector<8x128xi1>
      %326 = arith.select %325, %313, %275 : vector<8x128xi1>, vector<8x128xf32>
      %c6 = arith.constant 6 : index
      %c0_97 = arith.constant 0 : index
      %c0_98 = arith.constant 0 : index
      %327 = vector.load %arg3[%c6, %c0_97, %c0_98] : memref<8x8x384xbf16, #tpu.memory_space<vmem>>, vector<1x8x384xbf16>
      %328 = vector.shape_cast %327 : vector<1x8x384xbf16> to vector<8x384xbf16>
      %329 = arith.truncf %326 : vector<8x128xf32> to vector<8x128xbf16>
      %cst_99 = arith.constant dense<0.000000e+00> : vector<8x384xf32>
      %330 = tpu.matmul %329, %15, %cst_99 {dimension_numbers = #tpu.dot_dimension_numbers<[1], [0], [0], [1], [0, 0, 1, 1], [], []>} : vector<8x128xbf16>, vector<128x384xbf16>, vector<8x384xf32> -> vector<8x384xf32>
      %331 = vector.extract_strided_slice %328 {offsets = [0, 0], sizes = [8, 128], strides = [1, 1]} : vector<8x384xbf16> to vector<8x128xbf16>
      %332 = arith.extf %331 : vector<8x128xbf16> to vector<8x128xf32>
      %333 = vector.extract_strided_slice %330 {offsets = [0, 0], sizes = [8, 128], strides = [1, 1]} : vector<8x384xf32> to vector<8x128xf32>
      %334 = arith.addf %332, %333 : vector<8x128xf32>
      %cst_100 = arith.constant 5.000000e-01 : f32
      %335 = vector.broadcast %cst_100 : f32 to vector<8x128xf32>
      %336 = arith.mulf %335, %334 : vector<8x128xf32>
      %337 = math.tanh %336 : vector<8x128xf32>
      %cst_101 = arith.constant 5.000000e-01 : f32
      %338 = vector.broadcast %cst_101 : f32 to vector<8x128xf32>
      %339 = arith.mulf %338, %337 : vector<8x128xf32>
      %cst_102 = arith.constant 5.000000e-01 : f32
      %340 = vector.broadcast %cst_102 : f32 to vector<8x128xf32>
      %341 = arith.addf %339, %340 : vector<8x128xf32>
      %342 = vector.extract_strided_slice %328 {offsets = [0, 128], sizes = [8, 128], strides = [1, 1]} : vector<8x384xbf16> to vector<8x128xbf16>
      %343 = arith.extf %342 : vector<8x128xbf16> to vector<8x128xf32>
      %344 = vector.extract_strided_slice %330 {offsets = [0, 128], sizes = [8, 128], strides = [1, 1]} : vector<8x384xf32> to vector<8x128xf32>
      %345 = arith.addf %343, %344 : vector<8x128xf32>
      %cst_103 = arith.constant 5.000000e-01 : f32
      %346 = vector.broadcast %cst_103 : f32 to vector<8x128xf32>
      %347 = arith.mulf %346, %345 : vector<8x128xf32>
      %348 = math.tanh %347 : vector<8x128xf32>
      %cst_104 = arith.constant 5.000000e-01 : f32
      %349 = vector.broadcast %cst_104 : f32 to vector<8x128xf32>
      %350 = arith.mulf %349, %348 : vector<8x128xf32>
      %cst_105 = arith.constant 5.000000e-01 : f32
      %351 = vector.broadcast %cst_105 : f32 to vector<8x128xf32>
      %352 = arith.addf %350, %351 : vector<8x128xf32>
      %353 = vector.extract_strided_slice %328 {offsets = [0, 256], sizes = [8, 128], strides = [1, 1]} : vector<8x384xbf16> to vector<8x128xbf16>
      %354 = arith.extf %353 : vector<8x128xbf16> to vector<8x128xf32>
      %355 = vector.extract_strided_slice %330 {offsets = [0, 256], sizes = [8, 128], strides = [1, 1]} : vector<8x384xf32> to vector<8x128xf32>
      %356 = arith.addf %355, %18 : vector<8x128xf32>
      %357 = arith.mulf %341, %356 : vector<8x128xf32>
      %358 = arith.addf %354, %357 : vector<8x128xf32>
      %359 = math.tanh %358 : vector<8x128xf32>
      %cst_106 = arith.constant 1.000000e+00 : f32
      %360 = vector.broadcast %cst_106 : f32 to vector<8x128xf32>
      %361 = arith.subf %360, %352 : vector<8x128xf32>
      %362 = arith.mulf %361, %359 : vector<8x128xf32>
      %363 = arith.mulf %352, %326 : vector<8x128xf32>
      %364 = arith.addf %362, %363 : vector<8x128xf32>
      %c6_i32 = arith.constant 6 : i32
      %365 = arith.addi %0, %c6_i32 : i32
      %366 = vector.broadcast %365 : i32 to vector<8x1xi32>
      %367 = arith.cmpi sgt, %19, %366 : vector<8x1xi32>
      %cst_107 = arith.constant 0.000000e+00 : f32
      %368 = vector.shape_cast %367 : vector<8x1xi1> to vector<8x1xi1>
      %369 = vector.broadcast %368 : vector<8x1xi1> to vector<8x128xi1>
      %370 = vector.broadcast %cst_107 : f32 to vector<8x128xf32>
      %371 = arith.select %369, %364, %370 : vector<8x128xi1>, vector<8x128xf32>
      %c6_108 = arith.constant 6 : index
      %c0_109 = arith.constant 0 : index
      %c0_110 = arith.constant 0 : index
      %372 = vector.load %arg7[%c6_108, %c0_109, %c0_110] : memref<8x8x128xf32, #tpu.memory_space<vmem>>, vector<1x8x128xf32>
      %373 = vector.shape_cast %372 : vector<1x8x128xf32> to vector<8x128xf32>
      %374 = vector.shape_cast %371 : vector<8x128xf32> to vector<1x8x128xf32>
      tpu.vector_store %arg7[%c6_108, %c0_109, %c0_110], %374 {strides = array<i32>} : memref<8x8x128xf32, #tpu.memory_space<vmem>>, vector<1x8x128xf32>,
      %375 = vector.shape_cast %367 : vector<8x1xi1> to vector<8x1xi1>
      %376 = vector.broadcast %375 : vector<8x1xi1> to vector<8x128xi1>
      %377 = arith.select %376, %364, %326 : vector<8x128xi1>, vector<8x128xf32>
      %c7 = arith.constant 7 : index
      %c0_111 = arith.constant 0 : index
      %c0_112 = arith.constant 0 : index
      %378 = vector.load %arg3[%c7, %c0_111, %c0_112] : memref<8x8x384xbf16, #tpu.memory_space<vmem>>, vector<1x8x384xbf16>
      %379 = vector.shape_cast %378 : vector<1x8x384xbf16> to vector<8x384xbf16>
      %380 = arith.truncf %377 : vector<8x128xf32> to vector<8x128xbf16>
      %cst_113 = arith.constant dense<0.000000e+00> : vector<8x384xf32>
      %381 = tpu.matmul %380, %15, %cst_113 {dimension_numbers = #tpu.dot_dimension_numbers<[1], [0], [0], [1], [0, 0, 1, 1], [], []>} : vector<8x128xbf16>, vector<128x384xbf16>, vector<8x384xf32> -> vector<8x384xf32>
      %382 = vector.extract_strided_slice %379 {offsets = [0, 0], sizes = [8, 128], strides = [1, 1]} : vector<8x384xbf16> to vector<8x128xbf16>
      %383 = arith.extf %382 : vector<8x128xbf16> to vector<8x128xf32>
      %384 = vector.extract_strided_slice %381 {offsets = [0, 0], sizes = [8, 128], strides = [1, 1]} : vector<8x384xf32> to vector<8x128xf32>
      %385 = arith.addf %383, %384 : vector<8x128xf32>
      %cst_114 = arith.constant 5.000000e-01 : f32
      %386 = vector.broadcast %cst_114 : f32 to vector<8x128xf32>
      %387 = arith.mulf %386, %385 : vector<8x128xf32>
      %388 = math.tanh %387 : vector<8x128xf32>
      %cst_115 = arith.constant 5.000000e-01 : f32
      %389 = vector.broadcast %cst_115 : f32 to vector<8x128xf32>
      %390 = arith.mulf %389, %388 : vector<8x128xf32>
      %cst_116 = arith.constant 5.000000e-01 : f32
      %391 = vector.broadcast %cst_116 : f32 to vector<8x128xf32>
      %392 = arith.addf %390, %391 : vector<8x128xf32>
      %393 = vector.extract_strided_slice %379 {offsets = [0, 128], sizes = [8, 128], strides = [1, 1]} : vector<8x384xbf16> to vector<8x128xbf16>
      %394 = arith.extf %393 : vector<8x128xbf16> to vector<8x128xf32>
      %395 = vector.extract_strided_slice %381 {offsets = [0, 128], sizes = [8, 128], strides = [1, 1]} : vector<8x384xf32> to vector<8x128xf32>
      %396 = arith.addf %394, %395 : vector<8x128xf32>
      %cst_117 = arith.constant 5.000000e-01 : f32
      %397 = vector.broadcast %cst_117 : f32 to vector<8x128xf32>
      %398 = arith.mulf %397, %396 : vector<8x128xf32>
      %399 = math.tanh %398 : vector<8x128xf32>
      %cst_118 = arith.constant 5.000000e-01 : f32
      %400 = vector.broadcast %cst_118 : f32 to vector<8x128xf32>
      %401 = arith.mulf %400, %399 : vector<8x128xf32>
      %cst_119 = arith.constant 5.000000e-01 : f32
      %402 = vector.broadcast %cst_119 : f32 to vector<8x128xf32>
      %403 = arith.addf %401, %402 : vector<8x128xf32>
      %404 = vector.extract_strided_slice %379 {offsets = [0, 256], sizes = [8, 128], strides = [1, 1]} : vector<8x384xbf16> to vector<8x128xbf16>
      %405 = arith.extf %404 : vector<8x128xbf16> to vector<8x128xf32>
      %406 = vector.extract_strided_slice %381 {offsets = [0, 256], sizes = [8, 128], strides = [1, 1]} : vector<8x384xf32> to vector<8x128xf32>
      %407 = arith.addf %406, %18 : vector<8x128xf32>
      %408 = arith.mulf %392, %407 : vector<8x128xf32>
      %409 = arith.addf %405, %408 : vector<8x128xf32>
      %410 = math.tanh %409 : vector<8x128xf32>
      %cst_120 = arith.constant 1.000000e+00 : f32
      %411 = vector.broadcast %cst_120 : f32 to vector<8x128xf32>
      %412 = arith.subf %411, %403 : vector<8x128xf32>
      %413 = arith.mulf %412, %410 : vector<8x128xf32>
      %414 = arith.mulf %403, %377 : vector<8x128xf32>
      %415 = arith.addf %413, %414 : vector<8x128xf32>
      %c7_i32 = arith.constant 7 : i32
      %416 = arith.addi %0, %c7_i32 : i32
      %417 = vector.broadcast %416 : i32 to vector<8x1xi32>
      %418 = arith.cmpi sgt, %19, %417 : vector<8x1xi32>
      %cst_121 = arith.constant 0.000000e+00 : f32
      %419 = vector.shape_cast %418 : vector<8x1xi1> to vector<8x1xi1>
      %420 = vector.broadcast %419 : vector<8x1xi1> to vector<8x128xi1>
      %421 = vector.broadcast %cst_121 : f32 to vector<8x128xf32>
      %422 = arith.select %420, %415, %421 : vector<8x128xi1>, vector<8x128xf32>
      %c7_122 = arith.constant 7 : index
      %c0_123 = arith.constant 0 : index
      %c0_124 = arith.constant 0 : index
      %423 = vector.load %arg7[%c7_122, %c0_123, %c0_124] : memref<8x8x128xf32, #tpu.memory_space<vmem>>, vector<1x8x128xf32>
      %424 = vector.shape_cast %423 : vector<1x8x128xf32> to vector<8x128xf32>
      %425 = vector.shape_cast %422 : vector<8x128xf32> to vector<1x8x128xf32>
      tpu.vector_store %arg7[%c7_122, %c0_123, %c0_124], %425 {strides = array<i32>} : memref<8x8x128xf32, #tpu.memory_space<vmem>>, vector<1x8x128xf32>,
      %426 = vector.shape_cast %418 : vector<8x1xi1> to vector<8x1xi1>
      %427 = vector.broadcast %426 : vector<8x1xi1> to vector<8x128xi1>
      %428 = arith.select %427, %415, %377 : vector<8x128xi1>, vector<8x128xf32>
      %c0_125 = arith.constant 0 : index
      %c0_126 = arith.constant 0 : index
      %429 = vector.load %arg9[%c0_125, %c0_126] : memref<8x128xf32, #tpu.memory_space<vmem>>, vector<8x128xf32>
      tpu.vector_store %arg9[%c0_125, %c0_126], %428 {strides = array<i32>} : memref<8x128xf32, #tpu.memory_space<vmem>>, vector<8x128xf32>,
    } else {
    }
    %true = arith.constant true
    %9 = arith.xori %6, %true : i1
    %10 = arith.extui %9 : i1 to i32
    %c0_i32_2 = arith.constant 0 : i32
    %11 = arith.cmpi ne, %10, %c0_i32_2 : i32
    scf.if %11 {
      %cst = arith.constant 0.000000e+00 : f32
      %15 = vector.broadcast %cst : f32 to vector<8x8x128xf32>
      %c0 = arith.constant 0 : index
      %c0_5 = arith.constant 0 : index
      %c0_6 = arith.constant 0 : index
      %16 = vector.load %arg7[%c0, %c0_5, %c0_6] : memref<8x8x128xf32, #tpu.memory_space<vmem>>, vector<8x8x128xf32>
      tpu.vector_store %arg7[%c0, %c0_5, %c0_6], %15 {strides = array<i32>} : memref<8x8x128xf32, #tpu.memory_space<vmem>>, vector<8x8x128xf32>,
    } else {
    }
    %c0_i32_3 = arith.constant 0 : i32
    %12 = arith.cmpi eq, %arg1, %c0_i32_3 : i32
    %13 = arith.extui %12 : i1 to i32
    %c0_i32_4 = arith.constant 0 : i32
    %14 = arith.cmpi ne, %13, %c0_i32_4 : i32
    scf.if %14 {
      %c0 = arith.constant 0 : index
      %c0_5 = arith.constant 0 : index
      %15 = vector.load %arg9[%c0, %c0_5] : memref<8x128xf32, #tpu.memory_space<vmem>>, vector<8x128xf32>
      %c0_6 = arith.constant 0 : index
      %c0_7 = arith.constant 0 : index
      %16 = vector.load %arg8[%c0_6, %c0_7] : memref<8x128xf32, #tpu.memory_space<vmem>>, vector<8x128xf32>
      tpu.vector_store %arg8[%c0_6, %c0_7], %15 {strides = array<i32>} : memref<8x128xf32, #tpu.memory_space<vmem>>, vector<8x128xf32>,
    } else {
    }
    return
  }
  func.func @transform_0(%arg0: i32, %arg1: i32, %arg2: memref<1xi32, #tpu.memory_space<smem>>) -> (i32, i32, i32) {
    %c0_i32 = arith.constant 0 : i32
    %c0_i32_0 = arith.constant 0 : i32
    return %arg1, %arg0, %c0_i32 : i32, i32, i32
  }
  func.func @transform_1(%arg0: i32, %arg1: i32, %arg2: memref<1xi32, #tpu.memory_space<smem>>) -> (i32, i32) {
    %c0_i32 = arith.constant 0 : i32
    %c0_i32_0 = arith.constant 0 : i32
    return %arg0, %c0_i32 : i32, i32
  }
  func.func @transform_2(%arg0: i32, %arg1: i32, %arg2: memref<1xi32, #tpu.memory_space<smem>>) -> (i32, i32) {
    %c0_i32 = arith.constant 0 : i32
    %c0_i32_0 = arith.constant 0 : i32
    %c0_i32_1 = arith.constant 0 : i32
    return %c0_i32, %c0_i32_0 : i32, i32
  }
  func.func @transform_3(%arg0: i32, %arg1: i32, %arg2: memref<1xi32, #tpu.memory_space<smem>>) -> (i32, i32) {
    %c0_i32 = arith.constant 0 : i32
    %c0_i32_0 = arith.constant 0 : i32
    %c0_i32_1 = arith.constant 0 : i32
    return %c0_i32, %c0_i32_0 : i32, i32
  }
  func.func @transform_4(%arg0: i32, %arg1: i32, %arg2: memref<1xi32, #tpu.memory_space<smem>>) -> (i32, i32, i32) {
    %c0_i32 = arith.constant 0 : i32
    %c0_i32_0 = arith.constant 0 : i32
    return %arg1, %arg0, %c0_i32 : i32, i32, i32
  }
  func.func @transform_5(%arg0: i32, %arg1: i32, %arg2: memref<1xi32, #tpu.memory_space<smem>>) -> (i32, i32) {
    %c0_i32 = arith.constant 0 : i32
    %c0_i32_0 = arith.constant 0 : i32
    return %arg0, %c0_i32 : i32, i32
  }
}

</mosaic_0001>

<bundles_post_ra>
// kernel: rnn_forward.1
= control target key start
LH: loop header
LB: loop body
LE: loop exit
PB: predicated region body
PF: predicated region fallthrough
CT: control target
= control target key end

     0   :  { %v1053_v0 = vmov 0.0   ;;  %s1647_s0 = inlined_call_operand.<no memory space> [shape: s32[1], index: 0, kind: input, shape index: {}]   ;;  %s1648_s1 = inlined_call_operand.vmem [shape: bf16[8,8,384], index: 1, kind: input, shape index: {}]   ;;  %s1649_s2 = inlined_call_operand.vmem [shape: s32[8,1], index: 2, kind: input, shape index: {}]   ;;  %s1650_s3 = inlined_call_operand.vmem [shape: bf16[128,384], index: 3, kind: input, shape index: {}]   ;;  %s1651_s4 = inlined_call_operand.vmem [shape: f32[1,128], index: 4, kind: input, shape index: {}]   ;;  %s1652_s5 = inlined_call_operand.vmem [shape: f32[8,8,128], index: 5, kind: output, shape index: {0}]   ;;  %s1653_s6 = inlined_call_operand.vmem [shape: f32[8,128], index: 6, kind: output, shape index: {1}]  }
   0x1   :  { %26 = vst [vmem:[#allocation2] sm:$0xff] %v1053_v0  ;;  %p854_p0 = scmp.le.s32.totalorder %s1647_s0, 0 }
   0x3   :  { %31 = sbr.rel (%p854_p0) target bundleno = 1338 (0x53a), region = 25 }
   0x8   :  { %v941_v1 = vld [vmem:[%s1650_s3 + $0xa8] sm:$0xf]  ;;  %v996_v2 = vld [vmem:[%s1650_s3 + $0xb0] sm:$0xf0]  ;;  %v949_v3 = vld [vmem:[%s1650_s3 + $0xb0] sm:$0xf] }
   0x9   :  { %v1103_v4 = vor.u32 %v996_v2, %v941_v1  ;;  %v997_v5 = vld [vmem:[%s1650_s3 + $0xb8] sm:$0xf0]  ;;  %v995_v6 = vld [vmem:[%s1650_s3 + $0xac] sm:$0xf]  ;;  %v943_v7 = vld [vmem:[%s1650_s3 + $0xb4] sm:$0xf0] }
   0xa   :  { %v1114_v8 = vor.u32 %v997_v5, %v949_v3  ;;  %v1116_v9 = vor.u32 %v995_v6, %v943_v7  ;;  %v929_v10 = vld [vmem:[%s1650_s3 + $0x90] sm:$0xf]  ;;  %v993_v11 = vld [vmem:[%s1650_s3 + $0x98] sm:$0xf0]  ;;  %v937_v12 = vld [vmem:[%s1650_s3 + $0x98] sm:$0xf] }
   0xb   :  { %201 = vmatpush.bf16.msra.mxu0 %v1103_v4  ;;  %v1128_v13 = vor.u32 %v993_v11, %v929_v10  ;;  %v994_v14 = vld [vmem:[%s1650_s3 + $0xa0] sm:$0xf0]  ;;  %v992_v15 = vld [vmem:[%s1650_s3 + $0x94] sm:$0xf]  ;;  %v931_v16 = vld [vmem:[%s1650_s3 + $0x9c] sm:$0xf0]  ;;  %278 = vmatpush.bf16.msra.mxu3 %v1103_v4 }
   0xc   :  { %227 = vmatpush.bf16.msra.mxu2 %v1114_v8  ;;  %214 = vmatpush.bf16.msra.mxu1 %v1116_v9  ;;  %v1142_v17 = vor.u32 %v994_v14, %v937_v12  ;;  %v1144_v18 = vor.u32 %v992_v15, %v931_v16  ;;  %v917_v19 = vld [vmem:[%s1650_s3 + $0x78] sm:$0xf]  ;;  %v990_v20 = vld [vmem:[%s1650_s3 + $0x80] sm:$0xf0]  ;;  %v925_v21 = vld [vmem:[%s1650_s3 + $0x80] sm:$0xf] }
   0xd   :  { %v991_v22 = vld [vmem:[%s1650_s3 + $0x88] sm:$0xf0]  ;;  %v989_v23 = vld [vmem:[%s1650_s3 + $0x7c] sm:$0xf]  ;;  %v919_v24 = vld [vmem:[%s1650_s3 + $0x84] sm:$0xf0]  ;;  %v1165_v25 = vor.u32 %v990_v20, %v917_v19 }
   0xe   :  { %v1170_v26 = vor.u32 %v991_v22, %v925_v21  ;;  %v1172_v27 = vor.u32 %v989_v23, %v919_v24  ;;  %v905_v28 = vld [vmem:[%s1650_s3 + $0x60] sm:$0xf]  ;;  %v987_v29 = vld [vmem:[%s1650_s3 + $0x68] sm:$0xf0]  ;;  %v913_v30 = vld [vmem:[%s1650_s3 + $0x68] sm:$0xf] }
   0xf   :  { %202 = vmatpush.bf16.msra.mxu0 %v1128_v13  ;;  %279 = vmatpush.bf16.msra.mxu3 %v1128_v13  ;;  %v988_v31 = vld [vmem:[%s1650_s3 + $0x70] sm:$0xf0]  ;;  %v986_v32 = vld [vmem:[%s1650_s3 + $0x64] sm:$0xf]  ;;  %v907_v33 = vld [vmem:[%s1650_s3 + $0x6c] sm:$0xf0]  ;;  %v1193_v34 = vor.u32 %v987_v29, %v905_v28 }
  0x10   :  { %228 = vmatpush.bf16.msra.mxu2 %v1142_v17  ;;  %215 = vmatpush.bf16.msra.mxu1 %v1144_v18  ;;  %v1198_v35 = vor.u32 %v988_v31, %v913_v30  ;;  %v1200_v36 = vor.u32 %v986_v32, %v907_v33  ;;  %v893_v37 = vld [vmem:[%s1650_s3 + $0x48] sm:$0xf]  ;;  %v984_v38 = vld [vmem:[%s1650_s3 + $0x50] sm:$0xf0]  ;;  %v901_v39 = vld [vmem:[%s1650_s3 + $0x50] sm:$0xf] }
  0x11   :  { %v985_v40 = vld [vmem:[%s1650_s3 + $0x58] sm:$0xf0]  ;;  %v983_v41 = vld [vmem:[%s1650_s3 + $0x4c] sm:$0xf]  ;;  %v895_v42 = vld [vmem:[%s1650_s3 + $0x54] sm:$0xf0]  ;;  %v1221_v43 = vor.u32 %v984_v38, %v893_v37 }
  0x12   :  { %v881_v44 = vld [vmem:[%s1650_s3 + $0x30] sm:$0xf]  ;;  %v981_v45 = vld [vmem:[%s1650_s3 + $0x38] sm:$0xf0]  ;;  %v889_v46 = vld [vmem:[%s1650_s3 + $0x38] sm:$0xf]  ;;  %v1235_v47 = vor.u32 %v985_v40, %v901_v39  ;;  %v1237_v48 = vor.u32 %v983_v41, %v895_v42 }
  0x13   :  { %203 = vmatpush.bf16.msra.mxu0 %v1165_v25  ;;  %280 = vmatpush.bf16.msra.mxu3 %v1165_v25  ;;  %v982_v49 = vld [vmem:[%s1650_s3 + $0x40] sm:$0xf0]  ;;  %v980_v50 = vld [vmem:[%s1650_s3 + $0x34] sm:$0xf]  ;;  %v883_v52 = vld [vmem:[%s1650_s3 + $0x3c] sm:$0xf0]  ;;  %v1259_v55 = vor.u32 %v981_v45, %v881_v44 }
  0x14   :  { %229 = vmatpush.bf16.msra.mxu2 %v1170_v26  ;;  %216 = vmatpush.bf16.msra.mxu1 %v1172_v27  ;;  %v1248_v51 = vld [vmem:[%s1649_s2] sm:$0xff]  ;;  %v1054_v53 = vmov 0   ;;  %v869_v56 = vld [vmem:[%s1650_s3 + $0x18] sm:$0xf]  ;;  %v1266_v57 = vor.u32 %v982_v49, %v889_v46  ;;  %v1268_v58 = vor.u32 %v980_v50, %v883_v52  ;;  %v979_v61 = vld [vmem:[%s1650_s3 + $0x28] sm:$0xf0] }
  0x15   :  { %1001 = vset.pattern.permute.xlu0 %v1054_v53  ;;  %vm265_vm0 = vcmp.gt.s32.totalorder %v1248_v51, 0  ;;  %1002 = vset.pattern.permute.xlu1 %v1054_v53  ;;  %v978_v59 = vld [vmem:[%s1650_s3 + $0x20] sm:$0xf0]  ;;  %v877_v60 = vld [vmem:[%s1650_s3 + $0x20] sm:$0xf]  ;;  %vm343_vm1 = vcmp.gt.s32.totalorder %v1248_v51, 1 }
  0x16   :  { %v266_v54 = vsel %vm265_vm0, 1, %v1054_v53  ;;  %1003 = vset.pattern.permute.xlu2 %v1054_v53  ;;  %v977_v62 = vld [vmem:[%s1650_s3 + $0x1c] sm:$0xf]  ;;  %v871_v63 = vld [vmem:[%s1650_s3 + $0x24] sm:$0xf0]  ;;  %v1288_v0 = vor.u32 %v978_v59, %v869_v56  ;;  %v1295_v2 = vor.u32 %v979_v61, %v877_v60  ;;  %v344_v7 = vsel %vm343_vm1, 1, %v1054_v53 }
  0x17   :  { %204 = vmatpush.bf16.msra.mxu0 %v1193_v34  ;;  %281 = vmatpush.bf16.msra.mxu3 %v1193_v34  ;;  %v857_v1 = vld [vmem:[%s1650_s3] sm:$0xf]  ;;  %v1297_v3 = vor.u32 %v977_v62, %v871_v63  ;;  %v975_v5 = vld [vmem:[%s1650_s3 + $0x8] sm:$0xf0]  ;;  %v865_v6 = vld [vmem:[%s1650_s3 + $0x8] sm:$0xf] }
  0x18   :  { %230 = vmatpush.bf16.msra.mxu2 %v1198_v35  ;;  %217 = vmatpush.bf16.msra.mxu1 %v1200_v36  ;;  %v976_v10 = vld [vmem:[%s1650_s3 + $0x10] sm:$0xf0]  ;;  %v974_v11 = vld [vmem:[%s1650_s3 + $0x4] sm:$0xf]  ;;  %v859_v12 = vld [vmem:[%s1650_s3 + $0xc] sm:$0xf0]  ;;  %v1317_v14 = vor.u32 %v975_v5, %v857_v1 }
  0x19   :  { %268 = vperm.xlu0 %1001, %v266_v54   ;;  %v1319_v15 = vld [vmem:[#allocation2] sm:$0xff]  ;;  %v1323_v16 = vor.u32 %v976_v10, %v865_v6  ;;  %v1325_v19 = vor.u32 %v974_v11, %v859_v12  ;;  %vm738_vm2 = vcmp.gt.s32.totalorder %v1248_v51, 6  ;;  %v71_v44 = vld [vmem:[%s1648_s1 + $0x8] sm:$0xf]  ;;  %vm422_vm4 = vcmp.gt.s32.totalorder %v1248_v51, 2 }
  0x1a   :  { %v72_v20 = vpack.c.bf16 %v1319_v15, %v1319_v15  ;;  %v739_v21 = vsel %vm738_vm2, 1, %v1054_v53  ;;  %v70_v22 = vld [vmem:[%s1648_s1] sm:$0xff]  ;;  %v255_v52 = vunpack.c.l.bf16 %v71_v44  ;;  %vm501_vm5 = vcmp.gt.s32.totalorder %v1248_v51, 3  ;;  %v952_v44 = vld [vmem:[%s1648_s1 + $0x14] sm:$0xf] }
  0x1b   :  { %205 = vmatpush.bf16.msra.mxu0 %v1221_v43  ;;  %282 = vmatpush.bf16.msra.mxu3 %v1221_v43  ;;  %v247_v23 = vrot.slane %v70_v22, 4  ;;  %v240_v24 = vunpack.c.l.bf16 %v70_v22  ;;  %v1398_v39 = vld [vmem:[%s1651_s4] ss:$0 sm:$0xff]  ;;  %vm817_vm6 = vcmp.gt.s32.totalorder %v1248_v51, 7  ;;  %vm580_vm9 = vcmp.gt.s32.totalorder %v1248_v51, 4 }
  0x1c   :  { %231 = vmatpush.bf16.msra.mxu2 %v1235_v47  ;;  %218 = vmatpush.bf16.msra.mxu1 %v1237_v48  ;;  %vm659_vm10 = vcmp.gt.s32.totalorder %v1248_v51, 5 }
  0x1d   :  { %v249_v28 = vunpack.c.l.bf16 %v247_v23 }
  0x1f   :  { %206 = vmatpush.bf16.msra.mxu0 %v1259_v55  ;;  %283 = vmatpush.bf16.msra.mxu3 %v1259_v55 }
  0x20   :  { %232 = vmatpush.bf16.msra.mxu2 %v1266_v57  ;;  %219 = vmatpush.bf16.msra.mxu1 %v1268_v58 }
  0x21   :  { %346 = vperm.xlu0 %1001, %v344_v7  }
  0x23   :  { %207 = vmatpush.bf16.msra.mxu0 %v1288_v0  ;;  %284 = vmatpush.bf16.msra.mxu3 %v1288_v0 }
  0x24   :  { %233 = vmatpush.bf16.msra.mxu2 %v1295_v2  ;;  %220 = vmatpush.bf16.msra.mxu1 %v1297_v3 }
  0x27   :  { %208 = vmatpush.bf16.msra.mxu0 %v1317_v14  ;;  %285 = vmatpush.bf16.msra.mxu3 %v1317_v14 }
  0x28   :  { %234 = vmatpush.bf16.msra.mxu2 %v1323_v16  ;;  %221 = vmatpush.bf16.msra.mxu1 %v1325_v19 }
  0x29   :  { %741 = vperm.xlu0 %1001, %v739_v21  }
  0x2a   :  { %209 = vmatmul.bf16.vlgmr.msra.gmra.mxu0 %v72_v20 }
  0x2b   :  { %291 = vmatpush.bf16.msrb.mxu0 %v1116_v9  ;;  %235 = vmatmul.bf16.vlgmr.msra.gmra.mxu2 %v72_v20 }
  0x2c   :  { %304 = vmatpush.bf16.msrb.mxu1 %v1114_v8  ;;  %357 = vmatpush.bf16.msrb.mxu2 %v1103_v4 }
  0x2d   :  { %222 = vmatmul.bf16.vlgmr.msra.gmra.mxu1 %v72_v20  ;;  %370 = vmatpush.bf16.msrb.mxu3 %v1116_v9 }
  0x2f   :  { %292 = vmatpush.bf16.msrb.mxu0 %v1144_v18 }
  0x30   :  { %305 = vmatpush.bf16.msrb.mxu1 %v1142_v17  ;;  %358 = vmatpush.bf16.msrb.mxu2 %v1128_v13 }
  0x31   :  { %371 = vmatpush.bf16.msrb.mxu3 %v1144_v18 }
  0x33   :  { %293 = vmatpush.bf16.msrb.mxu0 %v1172_v27 }
  0x34   :  { %306 = vmatpush.bf16.msrb.mxu1 %v1170_v26  ;;  %359 = vmatpush.bf16.msrb.mxu2 %v1165_v25 }
  0x35   :  { %372 = vmatpush.bf16.msrb.mxu3 %v1172_v27 }
  0x37   :  { %294 = vmatpush.bf16.msrb.mxu0 %v1200_v36 }
  0x38   :  { %307 = vmatpush.bf16.msrb.mxu1 %v1198_v35  ;;  %360 = vmatpush.bf16.msrb.mxu2 %v1193_v34 }
  0x39   :  { %373 = vmatpush.bf16.msrb.mxu3 %v1200_v36 }
  0x3b   :  { %295 = vmatpush.bf16.msrb.mxu0 %v1237_v48 }
  0x3c   :  { %308 = vmatpush.bf16.msrb.mxu1 %v1235_v47  ;;  %361 = vmatpush.bf16.msrb.mxu2 %v1221_v43 }
  0x3d   :  { %374 = vmatpush.bf16.msrb.mxu3 %v1237_v48 }
  0x3f   :  { %296 = vmatpush.bf16.msrb.mxu0 %v1268_v58 }
  0x40   :  { %309 = vmatpush.bf16.msrb.mxu1 %v1266_v57  ;;  %362 = vmatpush.bf16.msrb.mxu2 %v1259_v55 }
  0x41   :  { %375 = vmatpush.bf16.msrb.mxu3 %v1268_v58 }
  0x43   :  { %297 = vmatpush.bf16.msrb.mxu0 %v1297_v3 }
  0x44   :  { %310 = vmatpush.bf16.msrb.mxu1 %v1295_v2  ;;  %363 = vmatpush.bf16.msrb.mxu2 %v1288_v0 }
  0x45   :  { %376 = vmatpush.bf16.msrb.mxu3 %v1297_v3 }
  0x47   :  { %298 = vmatpush.bf16.msrb.mxu0 %v1325_v19 }
  0x48   :  { %311 = vmatpush.bf16.msrb.mxu1 %v1323_v16  ;;  %364 = vmatpush.bf16.msrb.mxu2 %v1317_v14 }
  0x49   :  { %377 = vmatpush.bf16.msrb.mxu3 %v1325_v19 }
  0x4b   :  { %383 = vmatpush.bf16.msra.mxu0 %v1114_v8 }
  0x4c   :  { %436 = vmatpush.bf16.msra.mxu1 %v1103_v4  ;;  %449 = vmatpush.bf16.msra.mxu2 %v1116_v9 }
  0x4f   :  { %384 = vmatpush.bf16.msra.mxu0 %v1142_v17 }
  0x50   :  { %437 = vmatpush.bf16.msra.mxu1 %v1128_v13  ;;  %450 = vmatpush.bf16.msra.mxu2 %v1144_v18 }
  0x53   :  { %385 = vmatpush.bf16.msra.mxu0 %v1170_v26 }
  0x54   :  { %438 = vmatpush.bf16.msra.mxu1 %v1165_v25  ;;  %451 = vmatpush.bf16.msra.mxu2 %v1172_v27 }
  0x57   :  { %386 = vmatpush.bf16.msra.mxu0 %v1198_v35 }
  0x58   :  { %439 = vmatpush.bf16.msra.mxu1 %v1193_v34  ;;  %452 = vmatpush.bf16.msra.mxu2 %v1200_v36 }
  0x5b   :  { %387 = vmatpush.bf16.msra.mxu0 %v1235_v47 }
  0x5c   :  { %440 = vmatpush.bf16.msra.mxu1 %v1221_v43  ;;  %453 = vmatpush.bf16.msra.mxu2 %v1237_v48 }
  0x5f   :  { %388 = vmatpush.bf16.msra.mxu0 %v1266_v57 }
  0x60   :  { %441 = vmatpush.bf16.msra.mxu1 %v1259_v55  ;;  %454 = vmatpush.bf16.msra.mxu2 %v1268_v58 }
  0x63   :  { %389 = vmatpush.bf16.msra.mxu0 %v1295_v2 }
  0x64   :  { %442 = vmatpush.bf16.msra.mxu1 %v1288_v0  ;;  %455 = vmatpush.bf16.msra.mxu2 %v1297_v3 }
  0x67   :  { %390 = vmatpush.bf16.msra.mxu0 %v1323_v16 }
  0x68   :  { %443 = vmatpush.bf16.msra.mxu1 %v1317_v14  ;;  %456 = vmatpush.bf16.msra.mxu2 %v1325_v19 }
  0x8b   :  { %v269_v1 = vpop.permute.xlu0 %268 }
  0x8c   :  { %vm270_vm3 = vcmp.eq.s32.totalorder %v269_v1, 1 }
  0xa7   :  { %v210_v29 = vpop.f32.mrf.mxu0 }
  0xa8   :  { %v241_v30 = vadd.f32 %v240_v24, %v210_v29 }
  0xaa   :  { %v223_v31 = vpop.f32.mrf.mxu1  ;;  %v242_v33 = vmul.f32 0.5, %v241_v30 }
  0xab   :  { %v250_v32 = vadd.f32 %v249_v28, %v223_v31 }
  0xac   :  { %1005 = vtanh.f32 %v242_v33 }
  0xad   :  { %v251_v37 = vmul.f32 0.5, %v250_v32 }
  0xae   :  { %v236_v38 = vpop.f32.mrf.mxu2 }
  0xaf   :  { %1007 = vtanh.f32 %v251_v37  ;;  %v212_v40 = vpop.f32.mrf.mxu0  ;;  %v256_v49 = vadd.f32 %v1398_v39, %v236_v38  ;;  %v423_v38 = vsel %vm422_vm4, 1, %v1054_v53 }
  0xb0   :  { %425 = vperm.xlu1 %1002, %v423_v38  }
  0xb2   :  { %v225_v41 = vpop.f32.mrf.mxu1  ;;  %v1006_v42 = vpop.eup %1005 }
  0xb3   :  { %v244_v46 = vmul.f32 0.5, %v1006_v42  ;;  %v502_v41 = vsel %vm501_vm5, 1, %v1054_v53 }
  0xb5   :  { %v1008_v45 = vpop.eup %1007  ;;  %v245_v50 = vadd.f32 0.5, %v244_v46 }
  0xb6   :  { %v253_v54 = vmul.f32 0.5, %v1008_v45  ;;  %v238_v56 = vpop.f32.mrf.mxu2 }
  0xb7   :  { %v257_v59 = vmul.f32 %v256_v49, %v245_v50 }
  0xb8   :  { %v254_v61 = vadd.f32 0.5, %v253_v54  ;;  %504 = vperm.xlu1 %1002, %v502_v41   ;;  %v955_v41 = vld [vmem:[%s1648_s1 + $0x20] sm:$0xf] }
  0xb9   :  { %v258_v60 = vadd.f32 %v257_v59, %v255_v52  ;;  %v332_v52 = vunpack.c.l.bf16 %v952_v44 }
  0xba   :  { %v260_v62 = vsub.f32 1.0, %v254_v61  ;;  %v262_v6 = vmul.f32 %v254_v61, %v1319_v15 }
  0xbb   :  { %1009 = vtanh.f32 %v258_v60  ;;  %v818_v60 = vsel %vm817_vm6, 1, %v1054_v53 }
  0xc0   :  { %820 = vperm.xlu1 %1002, %v818_v60  }
  0xc1   :  { %v1010_v63 = vpop.eup %1009 }
  0xc2   :  { %v261_v5 = vmul.f32 %v1010_v63, %v260_v62 }
  0xc4   :  { %v263_v7 = vadd.f32 %v262_v6, %v261_v5  ;;  %v347_v6 = vpop.permute.xlu0 %346 }
  0xc5   :  { %vm348_vm7 = vcmp.eq.s32.totalorder %v347_v6, 1 }
  0xc6   :  { %v271_v10 = vsel %vm270_vm3, %v263_v7, 0.0  ;;  %v1406_v11 = vsel %vm270_vm3, %v263_v7, %v1319_v15  ;;  %v951_v15 = vld [vmem:[%s1648_s1 + $0xc] sm:$0xff] }
  0xc7   :  { %272 = vst [vmem:[%s1652_s5] sm:$0xff] %v271_v10  ;;  %v277_v12 = vpack.c.bf16 %v1406_v11, %v1406_v11  ;;  %v324_v20 = vrot.slane %v951_v15, 4  ;;  %v317_v24 = vunpack.c.l.bf16 %v951_v15 }
  0xc9   :  { %286 = vmatmul.bf16.vlgmr.msra.gmra.mxu3 %v277_v12  ;;  %299 = vmatmul.bf16.vlgmr.msrb.gmra.mxu0 %v277_v12  ;;  %v326_v23 = vunpack.c.l.bf16 %v324_v20 }
  0xca   :  { %312 = vmatmul.bf16.vlgmr.msrb.gmra.mxu1 %v277_v12  ;;  %462 = vmatpush.bf16.msra.mxu3 %v1114_v8 }
  0xcb   :  { %515 = vmatpush.bf16.msrb.mxu0 %v1103_v4  ;;  %528 = vmatpush.bf16.msrb.mxu1 %v1116_v9 }
  0xce   :  { %463 = vmatpush.bf16.msra.mxu3 %v1142_v17 }
  0xcf   :  { %516 = vmatpush.bf16.msrb.mxu0 %v1128_v13  ;;  %529 = vmatpush.bf16.msrb.mxu1 %v1144_v18 }
  0xd2   :  { %464 = vmatpush.bf16.msra.mxu3 %v1170_v26 }
  0xd3   :  { %517 = vmatpush.bf16.msrb.mxu0 %v1165_v25  ;;  %530 = vmatpush.bf16.msrb.mxu1 %v1172_v27 }
  0xd6   :  { %465 = vmatpush.bf16.msra.mxu3 %v1198_v35 }
  0xd7   :  { %518 = vmatpush.bf16.msrb.mxu0 %v1193_v34  ;;  %531 = vmatpush.bf16.msrb.mxu1 %v1200_v36 }
  0xda   :  { %466 = vmatpush.bf16.msra.mxu3 %v1235_v47 }
  0xdb   :  { %519 = vmatpush.bf16.msrb.mxu0 %v1221_v43  ;;  %532 = vmatpush.bf16.msrb.mxu1 %v1237_v48 }
  0xde   :  { %467 = vmatpush.bf16.msra.mxu3 %v1266_v57 }
  0xdf   :  { %520 = vmatpush.bf16.msrb.mxu0 %v1259_v55  ;;  %533 = vmatpush.bf16.msrb.mxu1 %v1268_v58 }
  0xe2   :  { %468 = vmatpush.bf16.msra.mxu3 %v1295_v2 }
  0xe3   :  { %521 = vmatpush.bf16.msrb.mxu0 %v1288_v0  ;;  %534 = vmatpush.bf16.msrb.mxu1 %v1297_v3 }
  0xe6   :  { %469 = vmatpush.bf16.msra.mxu3 %v1323_v16 }
  0xe7   :  { %522 = vmatpush.bf16.msrb.mxu0 %v1317_v14  ;;  %535 = vmatpush.bf16.msrb.mxu1 %v1325_v19 }
 0x146   :  { %v300_v21 = vpop.f32.mrf.mxu0 }
 0x147   :  { %v313_v22 = vpop.f32.mrf.mxu1  ;;  %v327_v28 = vadd.f32 %v326_v23, %v300_v21 }
 0x148   :  { %v333_v49 = vadd.f32 %v1398_v39, %v313_v22 }
 0x149   :  { %v328_v37 = vmul.f32 0.5, %v327_v28 }
 0x14c   :  { %v287_v29 = vpop.f32.mrf.mxu3 }
 0x14d   :  { %v318_v30 = vadd.f32 %v317_v24, %v287_v29 }
 0x14e   :  { %v302_v31 = vpop.f32.mrf.mxu0 }
 0x14f   :  { %v319_v32 = vmul.f32 0.5, %v318_v30  ;;  %v315_v33 = vpop.f32.mrf.mxu1 }
 0x151   :  { %1011 = vtanh.f32 %v319_v32 }
 0x152   :  { %1013 = vtanh.f32 %v328_v37 }
 0x154   :  { %v289_v40 = vpop.f32.mrf.mxu3 }
 0x157   :  { %v1012_v42 = vpop.eup %1011 }
 0x158   :  { %v321_v45 = vmul.f32 0.5, %v1012_v42  ;;  %v1014_v46 = vpop.eup %1013 }
 0x159   :  { %v330_v56 = vmul.f32 0.5, %v1014_v46 }
 0x15a   :  { %v322_v50 = vadd.f32 0.5, %v321_v45 }
 0x15b   :  { %v331_v61 = vadd.f32 0.5, %v330_v56 }
 0x15c   :  { %v334_v54 = vmul.f32 %v333_v49, %v322_v50  ;;  %v411_v49 = vunpack.c.l.bf16 %v955_v41 }
 0x15d   :  { %v337_v62 = vsub.f32 1.0, %v331_v61  ;;  %v339_v1 = vmul.f32 %v331_v61, %v1406_v11  ;;  %v426_v61 = vpop.permute.xlu1 %425 }
 0x15e   :  { %v335_v59 = vadd.f32 %v334_v54, %v332_v52  ;;  %vm427_vm8 = vcmp.eq.s32.totalorder %v426_v61, 1 }
 0x160   :  { %1015 = vtanh.f32 %v335_v59 }
 0x166   :  { %v1016_v63 = vpop.eup %1015 }
 0x167   :  { %v338_v5 = vmul.f32 %v1016_v63, %v337_v62 }
 0x169   :  { %v340_v7 = vadd.f32 %v339_v1, %v338_v5 }
 0x16b   :  { %v349_v10 = vsel %vm348_vm7, %v340_v7, 0.0  ;;  %v1452_v12 = vsel %vm348_vm7, %v340_v7, %v1406_v11  ;;  %v954_v11 = vld [vmem:[%s1648_s1 + $0x18] sm:$0xff] }
 0x16c   :  { %953 = vst [vmem:[%s1652_s5 + $0x8] sm:$0xff] %v349_v10  ;;  %v356_v15 = vpack.c.bf16 %v1452_v12, %v1452_v12  ;;  %v403_v20 = vrot.slane %v954_v11, 4  ;;  %v396_v22 = vunpack.c.l.bf16 %v954_v11  ;;  %v957_v10 = vld [vmem:[%s1648_s1 + $0x24] sm:$0xff] }
 0x16e   :  { %365 = vmatmul.bf16.vlgmr.msrb.gmra.mxu2 %v356_v15  ;;  %378 = vmatmul.bf16.vlgmr.msrb.gmra.mxu3 %v356_v15  ;;  %v405_v23 = vunpack.c.l.bf16 %v403_v20 }
 0x16f   :  { %391 = vmatmul.bf16.vlgmr.msra.gmra.mxu0 %v356_v15  ;;  %541 = vmatpush.bf16.msrb.mxu2 %v1114_v8  ;;  %v482_v15 = vrot.slane %v957_v10, 4 }
 0x170   :  { %594 = vmatpush.bf16.msrb.mxu3 %v1103_v4  ;;  %607 = vmatpush.bf16.msra.mxu0 %v1116_v9 }
 0x173   :  { %542 = vmatpush.bf16.msrb.mxu2 %v1142_v17 }
 0x174   :  { %595 = vmatpush.bf16.msrb.mxu3 %v1128_v13  ;;  %608 = vmatpush.bf16.msra.mxu0 %v1144_v18 }
 0x177   :  { %543 = vmatpush.bf16.msrb.mxu2 %v1170_v26 }
 0x178   :  { %596 = vmatpush.bf16.msrb.mxu3 %v1165_v25  ;;  %609 = vmatpush.bf16.msra.mxu0 %v1172_v27 }
 0x17b   :  { %544 = vmatpush.bf16.msrb.mxu2 %v1198_v35 }
 0x17c   :  { %597 = vmatpush.bf16.msrb.mxu3 %v1193_v34  ;;  %610 = vmatpush.bf16.msra.mxu0 %v1200_v36 }
 0x17f   :  { %545 = vmatpush.bf16.msrb.mxu2 %v1235_v47 }
 0x180   :  { %598 = vmatpush.bf16.msrb.mxu3 %v1221_v43  ;;  %611 = vmatpush.bf16.msra.mxu0 %v1237_v48 }
 0x183   :  { %546 = vmatpush.bf16.msrb.mxu2 %v1266_v57 }
 0x184   :  { %599 = vmatpush.bf16.msrb.mxu3 %v1259_v55  ;;  %612 = vmatpush.bf16.msra.mxu0 %v1268_v58 }
 0x187   :  { %547 = vmatpush.bf16.msrb.mxu2 %v1295_v2 }
 0x188   :  { %600 = vmatpush.bf16.msrb.mxu3 %v1288_v0  ;;  %613 = vmatpush.bf16.msra.mxu0 %v1297_v3 }
 0x18b   :  { %548 = vmatpush.bf16.msrb.mxu2 %v1323_v16 }
 0x18c   :  { %601 = vmatpush.bf16.msrb.mxu3 %v1317_v14  ;;  %614 = vmatpush.bf16.msra.mxu0 %v1325_v19 }
 0x1ec   :  { %v392_v21 = vpop.f32.mrf.mxu0 }
 0x1ed   :  { %v412_v45 = vadd.f32 %v1398_v39, %v392_v21 }
 0x1f1   :  { %v366_v24 = vpop.f32.mrf.mxu2  ;;  %v379_v28 = vpop.f32.mrf.mxu3 }
 0x1f2   :  { %v397_v29 = vadd.f32 %v396_v22, %v366_v24  ;;  %v406_v30 = vadd.f32 %v405_v23, %v379_v28  ;;  %v484_v22 = vunpack.c.l.bf16 %v482_v15  ;;  %v581_v23 = vsel %vm580_vm9, 1, %v1054_v53 }
 0x1f3   :  { %583 = vperm.xlu2 %1003, %v581_v23  }
 0x1f4   :  { %v398_v31 = vmul.f32 0.5, %v397_v29  ;;  %v394_v32 = vpop.f32.mrf.mxu0  ;;  %v407_v33 = vmul.f32 0.5, %v406_v30 }
 0x1f5   :  { %v660_v32 = vsel %vm659_vm10, 1, %v1054_v53 }
 0x1f6   :  { %1017 = vtanh.f32 %v398_v31 }
 0x1f7   :  { %1019 = vtanh.f32 %v407_v33 }
 0x1f9   :  { %v368_v37 = vpop.f32.mrf.mxu2  ;;  %v381_v38 = vpop.f32.mrf.mxu3 }
 0x1fa   :  { %v958_v37 = vld [vmem:[%s1648_s1 + $0x2c] sm:$0xf] }
 0x1fb   :  { %662 = vperm.xlu2 %1003, %v660_v32   ;;  %v490_v41 = vunpack.c.l.bf16 %v958_v37  ;;  %v963_v37 = vld [vmem:[%s1648_s1 + $0x3c] sm:$0xff] }
 0x1fc   :  { %v1018_v40 = vpop.eup %1017 }
 0x1fd   :  { %v400_v42 = vmul.f32 0.5, %v1018_v40  ;;  %v1020_v44 = vpop.eup %1019 }
 0x1fe   :  { %v409_v52 = vmul.f32 0.5, %v1020_v44 }
 0x1ff   :  { %v401_v46 = vadd.f32 0.5, %v400_v42 }
 0x200   :  { %v410_v56 = vadd.f32 0.5, %v409_v52 }
 0x201   :  { %v413_v50 = vmul.f32 %v412_v45, %v401_v46 }
 0x202   :  { %v416_v59 = vsub.f32 1.0, %v410_v56  ;;  %v418_v63 = vmul.f32 %v410_v56, %v1452_v12 }
 0x203   :  { %v414_v54 = vadd.f32 %v413_v50, %v411_v49 }
 0x205   :  { %1021 = vtanh.f32 %v414_v54 }
 0x20b   :  { %v1022_v60 = vpop.eup %1021 }
 0x20c   :  { %v417_v62 = vmul.f32 %v1022_v60, %v416_v59  ;;  %v505_v60 = vpop.permute.xlu1 %504 }
 0x20d   :  { %vm506_vm11 = vcmp.eq.s32.totalorder %v505_v60, 1 }
 0x20e   :  { %v419_v1 = vadd.f32 %v418_v63, %v417_v62 }
 0x210   :  { %v428_v5 = vsel %vm427_vm8, %v419_v1, 0.0  ;;  %v1492_v6 = vsel %vm427_vm8, %v419_v1, %v1452_v12  ;;  %v475_v12 = vunpack.c.l.bf16 %v957_v10 }
 0x211   :  { %956 = vst [vmem:[%s1652_s5 + $0x10] sm:$0xff] %v428_v5  ;;  %v435_v7 = vpack.c.bf16 %v1492_v6, %v1492_v6 }
 0x213   :  { %444 = vmatmul.bf16.vlgmr.msra.gmra.mxu1 %v435_v7  ;;  %457 = vmatmul.bf16.vlgmr.msra.gmra.mxu2 %v435_v7 }
 0x214   :  { %470 = vmatmul.bf16.vlgmr.msra.gmra.mxu3 %v435_v7  ;;  %620 = vmatpush.bf16.msra.mxu1 %v1114_v8 }
 0x215   :  { %673 = vmatpush.bf16.msra.mxu2 %v1103_v4  ;;  %686 = vmatpush.bf16.msra.mxu3 %v1116_v9 }
 0x218   :  { %621 = vmatpush.bf16.msra.mxu1 %v1142_v17 }
 0x219   :  { %674 = vmatpush.bf16.msra.mxu2 %v1128_v13  ;;  %687 = vmatpush.bf16.msra.mxu3 %v1144_v18 }
 0x21c   :  { %622 = vmatpush.bf16.msra.mxu1 %v1170_v26 }
 0x21d   :  { %675 = vmatpush.bf16.msra.mxu2 %v1165_v25  ;;  %688 = vmatpush.bf16.msra.mxu3 %v1172_v27 }
 0x220   :  { %623 = vmatpush.bf16.msra.mxu1 %v1198_v35 }
 0x221   :  { %676 = vmatpush.bf16.msra.mxu2 %v1193_v34  ;;  %689 = vmatpush.bf16.msra.mxu3 %v1200_v36 }
 0x224   :  { %624 = vmatpush.bf16.msra.mxu1 %v1235_v47 }
 0x225   :  { %677 = vmatpush.bf16.msra.mxu2 %v1221_v43  ;;  %690 = vmatpush.bf16.msra.mxu3 %v1237_v48 }
 0x228   :  { %625 = vmatpush.bf16.msra.mxu1 %v1266_v57 }
 0x229   :  { %678 = vmatpush.bf16.msra.mxu2 %v1259_v55  ;;  %691 = vmatpush.bf16.msra.mxu3 %v1268_v58 }
 0x22c   :  { %626 = vmatpush.bf16.msra.mxu1 %v1295_v2 }
 0x22d   :  { %679 = vmatpush.bf16.msra.mxu2 %v1288_v0  ;;  %692 = vmatpush.bf16.msra.mxu3 %v1297_v3 }
 0x230   :  { %627 = vmatpush.bf16.msra.mxu1 %v1323_v16 }
 0x231   :  { %680 = vmatpush.bf16.msra.mxu2 %v1317_v14  ;;  %693 = vmatpush.bf16.msra.mxu3 %v1325_v19 }
 0x290   :  { %v445_v11 = vpop.f32.mrf.mxu1 }
 0x291   :  { %v476_v20 = vadd.f32 %v475_v12, %v445_v11 }
 0x293   :  { %v477_v21 = vmul.f32 0.5, %v476_v20 }
 0x295   :  { %1023 = vtanh.f32 %v477_v21 }
 0x296   :  { %v458_v24 = vpop.f32.mrf.mxu2 }
 0x297   :  { %v485_v28 = vadd.f32 %v484_v22, %v458_v24  ;;  %v471_v29 = vpop.f32.mrf.mxu3  ;;  %v584_v24 = vpop.permute.xlu2 %583 }
 0x298   :  { %v447_v30 = vpop.f32.mrf.mxu1  ;;  %v491_v42 = vadd.f32 %v1398_v39, %v471_v29  ;;  %vm585_vm12 = vcmp.eq.s32.totalorder %v584_v24, 1 }
 0x299   :  { %v486_v31 = vmul.f32 0.5, %v485_v28 }
 0x29b   :  { %v1024_v33 = vpop.eup %1023  ;;  %1025 = vtanh.f32 %v486_v31 }
 0x29c   :  { %v479_v38 = vmul.f32 0.5, %v1024_v33 }
 0x29e   :  { %v480_v40 = vadd.f32 0.5, %v479_v38  ;;  %v460_v44 = vpop.f32.mrf.mxu2  ;;  %v640_v38 = vrot.slane %v963_v37, 4 }
 0x29f   :  { %v473_v45 = vpop.f32.mrf.mxu3 }
 0x2a0   :  { %v492_v46 = vmul.f32 %v491_v42, %v480_v40 }
 0x2a1   :  { %v1026_v51 = vpop.eup %1025 }
 0x2a2   :  { %v488_v49 = vmul.f32 0.5, %v1026_v51  ;;  %v493_v50 = vadd.f32 %v492_v46, %v490_v41  ;;  %v633_v41 = vunpack.c.l.bf16 %v963_v37  ;;  %v964_v46 = vld [vmem:[%s1648_s1 + $0x44] sm:$0xf] }
 0x2a4   :  { %1027 = vtanh.f32 %v493_v50  ;;  %v489_v53 = vadd.f32 0.5, %v488_v49 }
 0x2a6   :  { %v495_v52 = vsub.f32 1.0, %v489_v53  ;;  %v497_v56 = vmul.f32 %v489_v53, %v1492_v6 }
 0x2aa   :  { %v1028_v54 = vpop.eup %1027 }
 0x2ab   :  { %v496_v59 = vmul.f32 %v1028_v54, %v495_v52  ;;  %v648_v52 = vunpack.c.l.bf16 %v964_v46 }
 0x2ad   :  { %v498_v61 = vadd.f32 %v497_v56, %v496_v59 }
 0x2af   :  { %v507_v62 = vsel %vm506_vm11, %v498_v61, 0.0  ;;  %v1536_v63 = vsel %vm506_vm11, %v498_v61, %v1492_v6 }
 0x2b0   :  { %959 = vst [vmem:[%s1652_s5 + $0x18] sm:$0xff] %v507_v62  ;;  %v514_v1 = vpack.c.bf16 %v1536_v63, %v1536_v63 }
 0x2b2   :  { %523 = vmatmul.bf16.vlgmr.msrb.gmra.mxu0 %v514_v1  ;;  %536 = vmatmul.bf16.vlgmr.msrb.gmra.mxu1 %v514_v1 }
 0x2b3   :  { %549 = vmatmul.bf16.vlgmr.msrb.gmra.mxu2 %v514_v1  ;;  %699 = vmatpush.bf16.msrb.mxu0 %v1114_v8 }
 0x2b4   :  { %752 = vmatpush.bf16.msrb.mxu1 %v1103_v4  ;;  %765 = vmatpush.bf16.msrb.mxu2 %v1116_v9  ;;  %v960_v4 = vld [vmem:[%s1648_s1 + $0x30] sm:$0xff] }
 0x2b5   :  { %v561_v9 = vrot.slane %v960_v4, 4 }
 0x2b7   :  { %700 = vmatpush.bf16.msrb.mxu0 %v1142_v17 }
 0x2b8   :  { %753 = vmatpush.bf16.msrb.mxu1 %v1128_v13  ;;  %766 = vmatpush.bf16.msrb.mxu2 %v1144_v18  ;;  %v554_v13 = vunpack.c.l.bf16 %v960_v4  ;;  %v563_v18 = vunpack.c.l.bf16 %v561_v9 }
 0x2bb   :  { %701 = vmatpush.bf16.msrb.mxu0 %v1170_v26 }
 0x2bc   :  { %754 = vmatpush.bf16.msrb.mxu1 %v1165_v25  ;;  %767 = vmatpush.bf16.msrb.mxu2 %v1172_v27 }
 0x2bf   :  { %702 = vmatpush.bf16.msrb.mxu0 %v1198_v35 }
 0x2c0   :  { %755 = vmatpush.bf16.msrb.mxu1 %v1193_v34  ;;  %768 = vmatpush.bf16.msrb.mxu2 %v1200_v36 }
 0x2c3   :  { %703 = vmatpush.bf16.msrb.mxu0 %v1235_v47 }
 0x2c4   :  { %756 = vmatpush.bf16.msrb.mxu1 %v1221_v43  ;;  %769 = vmatpush.bf16.msrb.mxu2 %v1237_v48 }
 0x2c7   :  { %704 = vmatpush.bf16.msrb.mxu0 %v1266_v57 }
 0x2c8   :  { %757 = vmatpush.bf16.msrb.mxu1 %v1259_v55  ;;  %770 = vmatpush.bf16.msrb.mxu2 %v1268_v58 }
 0x2cb   :  { %705 = vmatpush.bf16.msrb.mxu0 %v1295_v2 }
 0x2cc   :  { %758 = vmatpush.bf16.msrb.mxu1 %v1288_v0  ;;  %771 = vmatpush.bf16.msrb.mxu2 %v1297_v3 }
 0x2cf   :  { %706 = vmatpush.bf16.msrb.mxu0 %v1323_v16 }
 0x2d0   :  { %759 = vmatpush.bf16.msrb.mxu1 %v1317_v14  ;;  %772 = vmatpush.bf16.msrb.mxu2 %v1325_v19  ;;  %v961_v14 = vld [vmem:[%s1648_s1 + $0x38] sm:$0xf] }
 0x2d1   :  { %v569_v7 = vunpack.c.l.bf16 %v961_v14 }
 0x32f   :  { %v524_v25 = vpop.f32.mrf.mxu0  ;;  %v537_v27 = vpop.f32.mrf.mxu1 }
 0x330   :  { %v555_v34 = vadd.f32 %v554_v13, %v524_v25  ;;  %v564_v36 = vadd.f32 %v563_v18, %v537_v27  ;;  %v966_v27 = vld [vmem:[%s1648_s1 + $0x48] sm:$0xff] }
 0x332   :  { %v556_v43 = vmul.f32 0.5, %v555_v34  ;;  %v565_v48 = vmul.f32 0.5, %v564_v36  ;;  %v719_v34 = vrot.slane %v966_v27, 4 }
 0x334   :  { %1029 = vtanh.f32 %v556_v43  ;;  %v712_v43 = vunpack.c.l.bf16 %v966_v27 }
 0x335   :  { %1031 = vtanh.f32 %v565_v48  ;;  %v721_v48 = vunpack.c.l.bf16 %v719_v34 }
 0x336   :  { %v550_v55 = vpop.f32.mrf.mxu2 }
 0x337   :  { %v526_v58 = vpop.f32.mrf.mxu0  ;;  %v539_v0 = vpop.f32.mrf.mxu1  ;;  %v570_v10 = vadd.f32 %v1398_v39, %v550_v55 }
 0x33a   :  { %v1030_v3 = vpop.eup %1029 }
 0x33b   :  { %v558_v19 = vmul.f32 0.5, %v1030_v3  ;;  %v1032_v5 = vpop.eup %1031 }
 0x33c   :  { %v567_v11 = vmul.f32 0.5, %v1032_v5 }
 0x33d   :  { %v559_v6 = vadd.f32 0.5, %v558_v19 }
 0x33e   :  { %v552_v12 = vpop.f32.mrf.mxu2  ;;  %v568_v21 = vadd.f32 0.5, %v567_v11 }
 0x33f   :  { %v571_v15 = vmul.f32 %v570_v10, %v559_v6  ;;  %v967_v12 = vld [vmem:[%s1648_s1 + $0x50] sm:$0xf] }
 0x340   :  { %v574_v22 = vsub.f32 1.0, %v568_v21  ;;  %v576_v29 = vmul.f32 %v568_v21, %v1536_v63 }
 0x341   :  { %v572_v20 = vadd.f32 %v571_v15, %v569_v7 }
 0x343   :  { %1033 = vtanh.f32 %v572_v20 }
 0x349   :  { %v1034_v23 = vpop.eup %1033 }
 0x34a   :  { %v575_v28 = vmul.f32 %v1034_v23, %v574_v22  ;;  %v727_v22 = vunpack.c.l.bf16 %v967_v12 }
 0x34c   :  { %v577_v30 = vadd.f32 %v576_v29, %v575_v28 }
 0x34e   :  { %v586_v31 = vsel %vm585_vm12, %v577_v30, 0.0  ;;  %v589_v32 = vsel %vm585_vm12, %v577_v30, %v1536_v63  ;;  %v663_v63 = vpop.permute.xlu2 %662 }
 0x34f   :  { %962 = vst [vmem:[%s1652_s5 + $0x20] sm:$0xff] %v586_v31  ;;  %v593_v33 = vpack.c.bf16 %v589_v32, %v589_v32  ;;  %vm664_vm13 = vcmp.eq.s32.totalorder %v663_v63, 1 }
 0x351   :  { %602 = vmatmul.bf16.vlgmr.msrb.gmra.mxu3 %v593_v33  ;;  %615 = vmatmul.bf16.vlgmr.msra.gmra.mxu0 %v593_v33 }
 0x352   :  { %628 = vmatmul.bf16.vlgmr.msra.gmra.mxu1 %v593_v33  ;;  %778 = vmatpush.bf16.msrb.mxu3 %v1114_v8 }
 0x356   :  { %779 = vmatpush.bf16.msrb.mxu3 %v1142_v17  ;;  %v642_v17 = vunpack.c.l.bf16 %v640_v38 }
 0x35a   :  { %780 = vmatpush.bf16.msrb.mxu3 %v1170_v26 }
 0x35e   :  { %781 = vmatpush.bf16.msrb.mxu3 %v1198_v35 }
 0x362   :  { %782 = vmatpush.bf16.msrb.mxu3 %v1235_v47 }
 0x366   :  { %783 = vmatpush.bf16.msrb.mxu3 %v1266_v57 }
 0x36a   :  { %784 = vmatpush.bf16.msrb.mxu3 %v1295_v2 }
 0x36e   :  { %785 = vmatpush.bf16.msrb.mxu3 %v1323_v16 }
 0x3ce   :  { %v616_v8 = vpop.f32.mrf.mxu0 }
 0x3cf   :  { %v629_v40 = vpop.f32.mrf.mxu1  ;;  %v643_v26 = vadd.f32 %v642_v17, %v616_v8 }
 0x3d0   :  { %v649_v50 = vadd.f32 %v1398_v39, %v629_v40 }
 0x3d1   :  { %v644_v57 = vmul.f32 0.5, %v643_v26 }
 0x3d4   :  { %v603_v42 = vpop.f32.mrf.mxu3 }
 0x3d5   :  { %v634_v35 = vadd.f32 %v633_v41, %v603_v42  ;;  %v969_v41 = vld [vmem:[%s1648_s1 + $0x54] sm:$0xff] }
 0x3d6   :  { %v618_v44 = vpop.f32.mrf.mxu0  ;;  %v791_v26 = vunpack.c.l.bf16 %v969_v41  ;;  %v798_v42 = vrot.slane %v969_v41, 4 }
 0x3d7   :  { %v635_v47 = vmul.f32 0.5, %v634_v35  ;;  %v631_v45 = vpop.f32.mrf.mxu1 }
 0x3d8   :  { %v800_v45 = vunpack.c.l.bf16 %v798_v42 }
 0x3d9   :  { %1035 = vtanh.f32 %v635_v47 }
 0x3da   :  { %1037 = vtanh.f32 %v644_v57 }
 0x3dc   :  { %v605_v2 = vpop.f32.mrf.mxu3 }
 0x3df   :  { %v1036_v16 = vpop.eup %1035 }
 0x3e0   :  { %v637_v51 = vmul.f32 0.5, %v1036_v16  ;;  %v1038_v49 = vpop.eup %1037 }
 0x3e1   :  { %v646_v56 = vmul.f32 0.5, %v1038_v49 }
 0x3e2   :  { %v638_v53 = vadd.f32 0.5, %v637_v51 }
 0x3e3   :  { %v647_v60 = vadd.f32 0.5, %v646_v56 }
 0x3e4   :  { %v650_v54 = vmul.f32 %v649_v50, %v638_v53  ;;  %v970_v50 = vld [vmem:[%s1648_s1 + $0x5c] sm:$0xf] }
 0x3e5   :  { %v653_v61 = vsub.f32 1.0, %v647_v60  ;;  %v655_v1 = vmul.f32 %v647_v60, %v589_v32 }
 0x3e6   :  { %v651_v59 = vadd.f32 %v650_v54, %v648_v52  ;;  %v806_v54 = vunpack.c.l.bf16 %v970_v50 }
 0x3e8   :  { %1039 = vtanh.f32 %v651_v59 }
 0x3ee   :  { %v1040_v62 = vpop.eup %1039 }
 0x3ef   :  { %v654_v4 = vmul.f32 %v1040_v62, %v653_v61 }
 0x3f1   :  { %v656_v9 = vadd.f32 %v655_v1, %v654_v4 }
 0x3f3   :  { %v665_v13 = vsel %vm664_vm13, %v656_v9, 0.0  ;;  %v668_v18 = vsel %vm664_vm13, %v656_v9, %v589_v32  ;;  %v742_v32 = vpop.permute.xlu0 %741 }
 0x3f4   :  { %965 = vst [vmem:[%s1652_s5 + $0x28] sm:$0xff] %v665_v13  ;;  %v672_v25 = vpack.c.bf16 %v668_v18, %v668_v18  ;;  %vm743_vm14 = vcmp.eq.s32.totalorder %v742_v32, 1 }
 0x3f6   :  { %681 = vmatmul.bf16.vlgmr.msra.gmra.mxu2 %v672_v25  ;;  %694 = vmatmul.bf16.vlgmr.msra.gmra.mxu3 %v672_v25 }
 0x3f7   :  { %707 = vmatmul.bf16.vlgmr.msrb.gmra.mxu0 %v672_v25 }
 0x474   :  { %v708_v36 = vpop.f32.mrf.mxu0 }
 0x475   :  { %v728_v20 = vadd.f32 %v1398_v39, %v708_v36 }
 0x479   :  { %v682_v55 = vpop.f32.mrf.mxu2  ;;  %v695_v58 = vpop.f32.mrf.mxu3 }
 0x47a   :  { %v713_v0 = vadd.f32 %v712_v43, %v682_v55  ;;  %v722_v3 = vadd.f32 %v721_v48, %v695_v58 }
 0x47c   :  { %v714_v14 = vmul.f32 0.5, %v713_v0  ;;  %v710_v19 = vpop.f32.mrf.mxu0  ;;  %v723_v5 = vmul.f32 0.5, %v722_v3 }
 0x47e   :  { %1041 = vtanh.f32 %v714_v14 }
 0x47f   :  { %1043 = vtanh.f32 %v723_v5 }
 0x481   :  { %v684_v6 = vpop.f32.mrf.mxu2  ;;  %v697_v7 = vpop.f32.mrf.mxu3 }
 0x484   :  { %v1042_v10 = vpop.eup %1041 }
 0x485   :  { %v716_v15 = vmul.f32 0.5, %v1042_v10  ;;  %v1044_v11 = vpop.eup %1043 }
 0x486   :  { %v725_v24 = vmul.f32 0.5, %v1044_v11 }
 0x487   :  { %v717_v21 = vadd.f32 0.5, %v716_v15 }
 0x488   :  { %v726_v29 = vadd.f32 0.5, %v725_v24 }
 0x489   :  { %v729_v23 = vmul.f32 %v728_v20, %v717_v21 }
 0x48a   :  { %v732_v30 = vsub.f32 1.0, %v726_v29  ;;  %v734_v37 = vmul.f32 %v726_v29, %v668_v18 }
 0x48b   :  { %v730_v28 = vadd.f32 %v729_v23, %v727_v22 }
 0x48d   :  { %1045 = vtanh.f32 %v730_v28 }
 0x493   :  { %v1046_v31 = vpop.eup %1045 }
 0x494   :  { %v733_v33 = vmul.f32 %v1046_v31, %v732_v30 }
 0x496   :  { %v735_v38 = vadd.f32 %v734_v37, %v733_v33 }
 0x498   :  { %v744_v8 = vsel %vm743_vm14, %v735_v38, 0.0  ;;  %v747_v40 = vsel %vm743_vm14, %v735_v38, %v668_v18  ;;  %v821_v18 = vpop.permute.xlu1 %820 }
 0x499   :  { %968 = vst [vmem:[%s1652_s5 + $0x30] sm:$0xff] %v744_v8  ;;  %v751_v17 = vpack.c.bf16 %v747_v40, %v747_v40  ;;  %vm822_vm15 = vcmp.eq.s32.totalorder %v821_v18, 1 }
 0x49b   :  { %760 = vmatmul.bf16.vlgmr.msrb.gmra.mxu1 %v751_v17  ;;  %773 = vmatmul.bf16.vlgmr.msrb.gmra.mxu2 %v751_v17 }
 0x49c   :  { %786 = vmatmul.bf16.vlgmr.msrb.gmra.mxu3 %v751_v17 }
 0x518   :  { %v761_v35 = vpop.f32.mrf.mxu1 }
 0x519   :  { %v792_v44 = vadd.f32 %v791_v26, %v761_v35 }
 0x51b   :  { %v793_v47 = vmul.f32 0.5, %v792_v44 }
 0x51d   :  { %1047 = vtanh.f32 %v793_v47 }
 0x51e   :  { %v774_v57 = vpop.f32.mrf.mxu2 }
 0x51f   :  { %v801_v2 = vadd.f32 %v800_v45, %v774_v57  ;;  %v787_v16 = vpop.f32.mrf.mxu3 }
 0x520   :  { %v763_v46 = vpop.f32.mrf.mxu1  ;;  %v807_v56 = vadd.f32 %v1398_v39, %v787_v16 }
 0x521   :  { %v802_v51 = vmul.f32 0.5, %v801_v2 }
 0x523   :  { %v1048_v49 = vpop.eup %1047  ;;  %1049 = vtanh.f32 %v802_v51 }
 0x524   :  { %v795_v53 = vmul.f32 0.5, %v1048_v49 }
 0x526   :  { %v796_v52 = vadd.f32 0.5, %v795_v53  ;;  %v776_v59 = vpop.f32.mrf.mxu2 }
 0x527   :  { %v789_v60 = vpop.f32.mrf.mxu3 }
 0x528   :  { %v808_v61 = vmul.f32 %v807_v56, %v796_v52 }
 0x529   :  { %v1050_v62 = vpop.eup %1049 }
 0x52a   :  { %v804_v63 = vmul.f32 0.5, %v1050_v62  ;;  %v809_v1 = vadd.f32 %v808_v61, %v806_v54 }
 0x52c   :  { %1051 = vtanh.f32 %v809_v1  ;;  %v805_v4 = vadd.f32 0.5, %v804_v63 }
 0x52e   :  { %v811_v9 = vsub.f32 1.0, %v805_v4  ;;  %v813_v25 = vmul.f32 %v805_v4, %v747_v40 }
 0x532   :  { %v1052_v13 = vpop.eup %1051 }
 0x533   :  { %v812_v27 = vmul.f32 %v1052_v13, %v811_v9 }
 0x535   :  { %v814_v34 = vadd.f32 %v813_v25, %v812_v27 }
 0x537   :  { %v823_v36 = vsel %vm822_vm15, %v814_v34, 0.0  ;;  %v826_v43 = vsel %vm822_vm15, %v814_v34, %v747_v40 }
 0x538   :  { %971 = vst [vmem:[%s1652_s5 + $0x38] sm:$0xff] %v823_v36 }
 0x539   :  { %827 = vst [vmem:[#allocation2] sm:$0xff] %v826_v43 }
 0x53a PF:  { %p973_p1 = scmp.gt.s32.totalorder %s1647_s0, 0 }
 0x53c   :  { %831 = sbr.rel (%p973_p1) target bundleno = 1354 (0x54a), region = 29 }
 0x541   :  { %v1055_v39 = vmov 0.0  }
 0x542   :  { %832 = vst [vmem:[%s1652_s5] sm:$0xff] %v1055_v39 }
 0x543   :  { %833 = vst [vmem:[%s1652_s5 + $0x8] sm:$0xff] %v1055_v39 }
 0x544   :  { %834 = vst [vmem:[%s1652_s5 + $0x10] sm:$0xff] %v1055_v39 }
 0x545   :  { %835 = vst [vmem:[%s1652_s5 + $0x18] sm:$0xff] %v1055_v39 }
 0x546   :  { %836 = vst [vmem:[%s1652_s5 + $0x20] sm:$0xff] %v1055_v39 }
 0x547   :  { %837 = vst [vmem:[%s1652_s5 + $0x28] sm:$0xff] %v1055_v39 }
 0x548   :  { %838 = vst [vmem:[%s1652_s5 + $0x30] sm:$0xff] %v1055_v39 }
 0x549   :  { %839 = vst [vmem:[%s1652_s5 + $0x38] sm:$0xff] %v1055_v39 }
 0x54a PF:  { %v843_v48 = vld [vmem:[#allocation2] sm:$0xff] }
 0x54b   :  { %844 = vst [vmem:[%s1653_s6] sm:$0xff] %v843_v48 }

</bundles_post_ra>
